<compile_context>
chip_gen: v7x
topology: tpu7x:2x2x1
jax: 0.10.0
libtpu: 0.0.40
codegen_flags: <defaults>
</compile_context>

<pallas_src>
import functools

import jax
import jax.numpy as jnp
from jax import lax
from jax.experimental import pallas as pl
from jax.experimental.pallas import tpu as pltpu


PT, PH, PW = 2, 4, 4     # 3-D patch size (t, h, w)
_LANE = 128


def _round_up(x, m):
    return (x + m - 1) // m * m


def _choose_tiling(m):
    """Return (tile_m, m_pad): big MXU-filling tiles; one step for small M."""
    m8 = _round_up(max(m, 8), 8)
    for tm in (1024, 512, 256):
        if m8 >= 2 * tm:            # >=2 grid steps -> "parallel" axis shards across TCs
            nt = -(-m8 // tm)
            return tm, nt * tm
    return m8, m8                   # small M: single step with TM = M_pad (no tiny tiles)


def _vmem_limit_bytes():
    """Generation-aware scoped-VMEM budget (~75% of physical, capped at 100 MiB)."""
    try:
        cap = int(pltpu.get_tpu_info().vmem_capacity_bytes)
        if cap >= 32 * 1024 * 1024:
            return min(cap * 3 // 4, 100 * 1024 * 1024)   # v7x ~48 MiB, v5e/v6e ~96 MiB
    except Exception:
        pass
    return 64 * 1024 * 1024


# ----------------------------- fused Pallas kernel --------------------------

def _fused_bridle_kernel(d, p_real, m_total,
                         flat_ref,
                         w1_ref, b1_ref,
                         enc_w2_ref, enc_b2_ref,
                         dec_w_ref, dec_b_ref,
                         cbt_ref, cbsq_ref,
                         est_w2_ref, est_b2_ref,
                         out_ref):
    x = flat_ref[...]                                    # [TM, Ppad] bf16 (streamed)
    tm = x.shape[0]

    # CE mask rides in spare feature lane `p_real` (its weight rows are zero, so it
    # is inert for every matmul); `valid` comes from the global row index, so no
    # extra narrow mask tensor / strided DMA is needed.
    ce_mask = x[:, p_real:p_real + 1].astype(jnp.float32)            # [TM, 1]
    row = lax.broadcasted_iota(jnp.int32, (tm, 1), 0) + pl.program_id(0) * tm
    valid = (row < m_total).astype(jnp.float32)                      # [TM, 1]

    def gelu(v):
        # TODO(synk): PyTorch nn.GELU default is the exact erf form; tanh approx here.
        # (bf16 EUP variants possible on v6e/v7x; kept f32 for v5e compatibility.)
        return jax.nn.gelu(v, approximate=True)

    # ---- fused first layer: enc/tok/est stage-1 share LHS x -> one MXU pass ----
    a1 = jnp.dot(x, w1_ref[...], preferred_element_type=jnp.float32) + b1_ref[...]
    a1 = gelu(a1)                                        # [TM, 3D] f32
    h1 = a1[:, 0:d]                                      # encoder stage-1
    z = a1[:, d:2 * d]                                   # tokenizer embedding
    e1 = a1[:, 2 * d:3 * d]                              # estimator stage-1

    # ---- encoder embedding + decoder logits (bf16 MXU, f32 accumulation) ----
    h = gelu(jnp.dot(h1.astype(jnp.bfloat16), enc_w2_ref[...],
                     preferred_element_type=jnp.float32) + enc_b2_ref[...])
    logits = jnp.dot(h.astype(jnp.bfloat16), dec_w_ref[...],
                     preferred_element_type=jnp.float32) + dec_b_ref[...]    # [TM, K]

    # ---- tokenizer VQ nearest-code search (bf16 cross-term on MXU, f32 acc) ----
    cross = jnp.dot(z.astype(jnp.bfloat16), cbt_ref[...],
                    preferred_element_type=jnp.float32)                      # [TM, K]
    zsq = jnp.sum(z * z, axis=-1, keepdims=True)
    dists = zsq - 2.0 * cross + cbsq_ref[...]                                # [TM, K]
    min_d_raw = jnp.min(dists, axis=-1, keepdims=True)
    min_d = jnp.maximum(min_d_raw, 0.0)     # guard f32 cancellation of the expansion

    # ---- masked cross-entropy vs nearest code (no iota / one-hot / argmin idx) ----
    mmax = jnp.max(logits, axis=-1, keepdims=True)
    lse = mmax + jnp.log(jnp.sum(jnp.exp(logits - mmax), axis=-1, keepdims=True))
    label_logit = jnp.max(jnp.where(dists == min_d_raw, logits, -jnp.inf),
                          axis=-1, keepdims=True)                            # [TM, 1]
    ce = (lse - label_logit) * ce_mask * valid

    # ---- estimator output + cosine similarity vs encoder embedding ----
    est = jnp.dot(e1.astype(jnp.bfloat16), est_w2_ref[...],
                  preferred_element_type=jnp.float32) + est_b2_ref[...]      # [TM, D]
    eps = 1e-12
    hn = h * lax.rsqrt(jnp.sum(h * h, axis=-1, keepdims=True) + eps)
    en = est * lax.rsqrt(jnp.sum(est * est, axis=-1, keepdims=True) + eps)
    cos = jnp.sum(hn * en, axis=-1, keepdims=True)                           # [TM, 1]

    # ---- per-tile partial sums -> lane-dense (8, 128) output block ----
    ce_sum = jnp.sum(ce)
    mask_sum = jnp.sum(ce_mask * valid)
    embed_sum = jnp.sum(min_d * valid)
    cos_sum = jnp.sum((1.0 - cos) * valid)

    lane = lax.broadcasted_iota(jnp.int32, out_ref.shape, 1)
    out = jnp.where(lane == 0, ce_sum, 0.0)
    out = jnp.where(lane == 1, mask_sum, out)
    out = jnp.where(lane == 2, embed_sum, out)
    out = jnp.where(lane == 3, cos_sum, out)
    out_ref[...] = out


def fused_forward_sums(flat, params, *, tm, p_real, m_total):
    """Run the fused kernel over M tiles; returns per-tile (8,128) partial sums."""
    m_pad, p_pad = flat.shape
    d = params["enc_w2"].shape[0]
    k = params["dec_w"].shape[1]
    nt = m_pad // tm
    kernel = functools.partial(_fused_bridle_kernel, d, p_real, m_total)

    def run(single_buffer_weights):
        def wspec(shape):
            # Constant index_map -> fetched once, VMEM-resident across all tiles.
            # Buffered(1) halves the resident weight/codebook VMEM footprint.
            pm = pl.Buffered(1) if single_buffer_weights else None
            return pl.BlockSpec(shape, lambda i: (0, 0), pipeline_mode=pm)

        return pl.pallas_call(
            kernel,
            grid=(nt,),
            in_specs=[
                pl.BlockSpec((tm, p_pad), lambda i: (i, 0)),  # streamed token tiles
                wspec((p_pad, 3 * d)), wspec((1, 3 * d)),     # fused first layer
                wspec((d, d)), wspec((1, d)),                 # encoder layer 2
                wspec((d, k)), wspec((1, k)),                 # decoder head
                wspec((d, k)), wspec((1, k)),                 # codebook^T (bf16), ||c||^2
                wspec((d, d)), wspec((1, d)),                 # estimator layer 2
            ],
            out_specs=pl.BlockSpec((8, _LANE), lambda i: (i, 0)),
            out_shape=jax.ShapeDtypeStruct((nt * 8, _LANE), jnp.float32),
            compiler_params=pltpu.CompilerParams(
                dimension_semantics=("parallel",),
                vmem_limit_bytes=_vmem_limit_bytes(),
            ),
        )(flat,
          params["w1_all"], params["b1_all"],
          params["enc_w2"], params["enc_b2"],
          params["dec_w"], params["dec_b"],
          params["cb_t"], params["cb_sq"],
          params["est_w2"], params["est_b2"])

    try:
        return run(True)
    except Exception:
        # TODO(synk): pl.Buffered(1) single-buffering unsupported on this JAX build;
        # fall back to default double-buffered weight specs.
        return run(False)


# ------------------------------ glue (plain JAX) ----------------------------

def patchify(x):
    # x: [B, C, T, H, W] -> [B, N, C*pt*ph*pw]
    B, C, T, H, W = x.shape
    x = x.reshape(B, C, T // PT, PT, H // PH, PH, W // PW, PW)
    x = x.transpose(0, 2, 4, 6, 1, 3, 5, 7)
    N = (T // PT) * (H // PH) * (W // PW)
    return x.reshape(B, N, C * PT * PH * PW)


def init_params(key, P, D, K):
    """Stub sub-module parameters.

    First-layer weights of encoder / tokenizer / estimator are fused along the
    output axis into one [Ppad, 3D] bf16 matrix (single MXU pass per tile).
    Padded input rows (>= P, including the mask lane) are zero, so they are inert.
    """
    p_pad = _round_up(P + 1, _LANE)        # >=1 spare lane to carry the CE mask
    keys = jax.random.split(key, 7)
    s = 0.02

    def w(k, shape):
        return jax.random.normal(k, shape, jnp.float32) * s

    w1 = jnp.concatenate([w(keys[0], (P, D)),      # encoder embed
                          w(keys[3], (P, D)),      # tokenizer embed
                          w(keys[5], (P, D))],     # estimator layer 1
                         axis=1)
    w1 = jnp.pad(w1, ((0, p_pad - P), (0, 0)))     # zero rows for pad + mask lanes

    codebook = jax.random.normal(keys[4], (K, D), jnp.float32).astype(jnp.bfloat16)
    cb_f32 = codebook.astype(jnp.float32)

    return dict(
        w1_all=w1.astype(jnp.bfloat16),
        b1_all=jnp.zeros((1, 3 * D), jnp.float32),
        enc_w2=w(keys[1], (D, D)).astype(jnp.bfloat16),
        enc_b2=jnp.zeros((1, D), jnp.float32),
        dec_w=w(keys[2], (D, K)).astype(jnp.bfloat16),
        dec_b=jnp.zeros((1, K), jnp.float32),
        cb_t=codebook.T,                                     # [D, K] bf16 pre-transposed
        cb_sq=jnp.sum(cb_f32 * cb_f32, axis=-1).reshape(1, K),
        est_w2=w(keys[6], (D, D)).astype(jnp.bfloat16),
        est_b2=jnp.zeros((1, D), jnp.float32),
    )


def joint_bridle3d_forward(params, x, mask, tokenizer_loss_ratio=0.1,
                           tokenizer_training=True):
    """Mirrors jointBRIDLE3D.forward (codebook_type='legacy', CE model loss):
       encoder CE loss + ratio * (cosine-similarity loss + VQ embed loss).
       Codebook-training toggles only gate parameter updates -> no-ops here."""
    # TODO(synk): forward-only; training gradients would need custom_vjp / bwd kernels.
    patches = patchify(x)                            # [B, N, P]
    B, N, P = patches.shape
    M = B * N
    p_pad = params["w1_all"].shape[0]

    flat = patches.reshape(M, P).astype(jnp.bfloat16)
    ce_mask = mask.reshape(M, 1).astype(jnp.bfloat16)      # 0/1 exact in bf16
    flat = jnp.concatenate([flat, ce_mask], axis=1)        # mask rides spare lane P
    if p_pad > P + 1:
        flat = jnp.pad(flat, ((0, 0), (0, p_pad - (P + 1))))

    tm, m_pad = _choose_tiling(M)
    if m_pad > M:
        flat = jnp.pad(flat, ((0, m_pad - M), (0, 0)))

    partials = fused_forward_sums(flat, params, tm=tm, p_real=P, m_total=M)
    nt = m_pad // tm
    totals = jnp.sum(partials.reshape(nt, 8, _LANE)[:, 0, :], axis=0)
    ce_sum, mask_sum, embed_sum, cos_sum = totals[0], totals[1], totals[2], totals[3]

    encoder_loss = ce_sum / jnp.maximum(mask_sum, 1.0)     # mean over masked tokens
    if not tokenizer_training:
        return encoder_loss

    embed_loss = embed_sum / M        # mean over tokens of min ||z - c||^2
    cos_loss = cos_sum / M            # mean(1 - cos)
    return encoder_loss + tokenizer_loss_ratio * (cos_loss + embed_loss)


# ----------------------------------- main -----------------------------------

if __name__ == "__main__":
    key = jax.random.PRNGKey(0)
    kx, km, kp = jax.random.split(key, 3)

    B, C, T, H, W = 2, 3, 4, 8, 8
    D_hidden, K_codes = 128, 128                   # lane-dense hidden / codebook dims
    P_patch = C * PT * PH * PW                     # 96 (mask lane -> padded to 128)
    N_tokens = (T // PT) * (H // PH) * (W // PW)   # 8

    x = jax.random.normal(kx, (B, C, T, H, W), jnp.float32)
    mask = (jax.random.uniform(km, (B, N_tokens)) < 0.5).astype(jnp.float32)
    mask = mask.at[0, 0].set(1.0)                  # guarantee >=1 masked token

    params = init_params(kp, P_patch, D_hidden, K_codes)

    loss = joint_bridle3d_forward(params, x, mask, tokenizer_loss_ratio=0.1,
                                  tokenizer_training=True)
    loss = jax.block_until_ready(loss)
    assert loss.shape == () and bool(jnp.isfinite(loss))
    print("KERNEL_OK")
</pallas_src>

<mosaic_0001>
module attributes {stable_mosaic.version = 11 : i64} {
  func.func @_fused_bridle_kernel(%arg0: i32, %arg1: memref<16x128xbf16, #tpu.memory_space<vmem>>, %arg2: memref<128x384xbf16, #tpu.memory_space<vmem>>, %arg3: memref<1x384xf32, #tpu.memory_space<vmem>>, %arg4: memref<128x128xbf16, #tpu.memory_space<vmem>>, %arg5: memref<1x128xf32, #tpu.memory_space<vmem>>, %arg6: memref<128x128xbf16, #tpu.memory_space<vmem>>, %arg7: memref<1x128xf32, #tpu.memory_space<vmem>>, %arg8: memref<128x128xbf16, #tpu.memory_space<vmem>>, %arg9: memref<1x128xf32, #tpu.memory_space<vmem>>, %arg10: memref<128x128xbf16, #tpu.memory_space<vmem>>, %arg11: memref<1x128xf32, #tpu.memory_space<vmem>>, %arg12: memref<8x128xf32, #tpu.memory_space<vmem>>) attributes {dimension_semantics = [#tpu.dimension_semantics<parallel>], iteration_bounds = array<i64: 1>, scalar_prefetch = 0 : i64, scratch_operands = 0 : i64, tpu.core_type = #tpu.core_type<tc>, window_params = [{transform_indices = @transform_0, window_bounds = array<i64: 16, 128>}, {pipeline_mode = #tpu.pipeline_mode<synchronous>, transform_indices = @transform_1, window_bounds = array<i64: 128, 384>}, {pipeline_mode = #tpu.pipeline_mode<synchronous>, transform_indices = @transform_2, window_bounds = array<i64: 1, 384>}, {pipeline_mode = #tpu.pipeline_mode<synchronous>, transform_indices = @transform_3, window_bounds = array<i64: 128, 128>}, {pipeline_mode = #tpu.pipeline_mode<synchronous>, transform_indices = @transform_4, window_bounds = array<i64: 1, 128>}, {pipeline_mode = #tpu.pipeline_mode<synchronous>, transform_indices = @transform_5, window_bounds = array<i64: 128, 128>}, {pipeline_mode = #tpu.pipeline_mode<synchronous>, transform_indices = @transform_6, window_bounds = array<i64: 1, 128>}, {pipeline_mode = #tpu.pipeline_mode<synchronous>, transform_indices = @transform_7, window_bounds = array<i64: 128, 128>}, {pipeline_mode = #tpu.pipeline_mode<synchronous>, transform_indices = @transform_8, window_bounds = array<i64: 1, 128>}, {pipeline_mode = #tpu.pipeline_mode<synchronous>, transform_indices = @transform_9, window_bounds = array<i64: 128, 128>}, {pipeline_mode = #tpu.pipeline_mode<synchronous>, transform_indices = @transform_10, window_bounds = array<i64: 1, 128>}, {transform_indices = @transform_11, window_bounds = array<i64: 8, 128>}]} {
    %c0 = arith.constant 0 : index
    %c0_0 = arith.constant 0 : index
    %0 = vector.load %arg1[%c0, %c0_0] : memref<16x128xbf16, #tpu.memory_space<vmem>>, vector<16x128xbf16>
    %1 = vector.extract_strided_slice %0 {offsets = [0, 96], sizes = [16, 1], strides = [1, 1]} : vector<16x128xbf16> to vector<16x1xbf16>
    %2 = arith.extf %1 : vector<16x1xbf16> to vector<16x1xf32>
    %3 = tpu.iota {dimensions = array<i32: 0>} : vector<16x1xi32>
    %c16_i32 = arith.constant 16 : i32
    %4 = arith.muli %arg0, %c16_i32 : i32
    %5 = vector.broadcast %4 : i32 to vector<16x1xi32>
    %6 = arith.addi %3, %5 : vector<16x1xi32>
    %c16_i32_1 = arith.constant 16 : i32
    %7 = vector.broadcast %c16_i32_1 : i32 to vector<16x1xi32>
    %8 = arith.cmpi slt, %6, %7 : vector<16x1xi32>
    %9 = arith.extui %8 : vector<16x1xi1> to vector<16x1xi32>
    %10 = arith.sitofp %9 : vector<16x1xi32> to vector<16x1xf32>
    %c0_2 = arith.constant 0 : index
    %c0_3 = arith.constant 0 : index
    %11 = vector.load %arg2[%c0_2, %c0_3] : memref<128x384xbf16, #tpu.memory_space<vmem>>, vector<128x384xbf16>
    %cst = arith.constant dense<0.000000e+00> : vector<16x384xf32>
    %12 = tpu.matmul %0, %11, %cst {dimension_numbers = #tpu.dot_dimension_numbers<[1], [0], [0], [1], [0, 0, 1, 1], [], []>} : vector<16x128xbf16>, vector<128x384xbf16>, vector<16x384xf32> -> vector<16x384xf32>
    %c0_4 = arith.constant 0 : index
    %c0_5 = arith.constant 0 : index
    %13 = vector.load %arg3[%c0_4, %c0_5] : memref<1x384xf32, #tpu.memory_space<vmem>>, vector<1x384xf32>
    %14 = vector.broadcast %13 : vector<1x384xf32> to vector<16x384xf32>
    %15 = arith.addf %12, %14 : vector<16x384xf32>
    %16 = arith.mulf %15, %15 : vector<16x384xf32>
    %17 = arith.mulf %15, %16 : vector<16x384xf32>
    %cst_6 = arith.constant 4.471500e-02 : f32
    %18 = vector.broadcast %cst_6 : f32 to vector<16x384xf32>
    %19 = arith.mulf %18, %17 : vector<16x384xf32>
    %20 = arith.addf %15, %19 : vector<16x384xf32>
    %cst_7 = arith.constant 0.797884583 : f32
    %21 = vector.broadcast %cst_7 : f32 to vector<16x384xf32>
    %22 = arith.mulf %21, %20 : vector<16x384xf32>
    %23 = math.tanh %22 : vector<16x384xf32>
    %cst_8 = arith.constant 1.000000e+00 : f32
    %24 = vector.broadcast %cst_8 : f32 to vector<16x384xf32>
    %25 = arith.addf %24, %23 : vector<16x384xf32>
    %cst_9 = arith.constant 5.000000e-01 : f32
    %26 = vector.broadcast %cst_9 : f32 to vector<16x384xf32>
    %27 = arith.mulf %26, %25 : vector<16x384xf32>
    %28 = arith.mulf %15, %27 : vector<16x384xf32>
    %29 = vector.extract_strided_slice %28 {offsets = [0, 0], sizes = [16, 128], strides = [1, 1]} : vector<16x384xf32> to vector<16x128xf32>
    %30 = vector.extract_strided_slice %28 {offsets = [0, 128], sizes = [16, 128], strides = [1, 1]} : vector<16x384xf32> to vector<16x128xf32>
    %31 = vector.extract_strided_slice %28 {offsets = [0, 256], sizes = [16, 128], strides = [1, 1]} : vector<16x384xf32> to vector<16x128xf32>
    %32 = arith.truncf %29 : vector<16x128xf32> to vector<16x128xbf16>
    %c0_10 = arith.constant 0 : index
    %c0_11 = arith.constant 0 : index
    %33 = vector.load %arg4[%c0_10, %c0_11] : memref<128x128xbf16, #tpu.memory_space<vmem>>, vector<128x128xbf16>
    %cst_12 = arith.constant dense<0.000000e+00> : vector<16x128xf32>
    %34 = tpu.matmul %32, %33, %cst_12 {dimension_numbers = #tpu.dot_dimension_numbers<[1], [0], [0], [1], [0, 0, 1, 1], [], []>} : vector<16x128xbf16>, vector<128x128xbf16>, vector<16x128xf32> -> vector<16x128xf32>
    %c0_13 = arith.constant 0 : index
    %c0_14 = arith.constant 0 : index
    %35 = vector.load %arg5[%c0_13, %c0_14] : memref<1x128xf32, #tpu.memory_space<vmem>>, vector<1x128xf32>
    %36 = vector.broadcast %35 : vector<1x128xf32> to vector<16x128xf32>
    %37 = arith.addf %34, %36 : vector<16x128xf32>
    %38 = arith.mulf %37, %37 : vector<16x128xf32>
    %39 = arith.mulf %37, %38 : vector<16x128xf32>
    %cst_15 = arith.constant 4.471500e-02 : f32
    %40 = vector.broadcast %cst_15 : f32 to vector<16x128xf32>
    %41 = arith.mulf %40, %39 : vector<16x128xf32>
    %42 = arith.addf %37, %41 : vector<16x128xf32>
    %cst_16 = arith.constant 0.797884583 : f32
    %43 = vector.broadcast %cst_16 : f32 to vector<16x128xf32>
    %44 = arith.mulf %43, %42 : vector<16x128xf32>
    %45 = math.tanh %44 : vector<16x128xf32>
    %cst_17 = arith.constant 1.000000e+00 : f32
    %46 = vector.broadcast %cst_17 : f32 to vector<16x128xf32>
    %47 = arith.addf %46, %45 : vector<16x128xf32>
    %cst_18 = arith.constant 5.000000e-01 : f32
    %48 = vector.broadcast %cst_18 : f32 to vector<16x128xf32>
    %49 = arith.mulf %48, %47 : vector<16x128xf32>
    %50 = arith.mulf %37, %49 : vector<16x128xf32>
    %51 = arith.truncf %50 : vector<16x128xf32> to vector<16x128xbf16>
    %c0_19 = arith.constant 0 : index
    %c0_20 = arith.constant 0 : index
    %52 = vector.load %arg6[%c0_19, %c0_20] : memref<128x128xbf16, #tpu.memory_space<vmem>>, vector<128x128xbf16>
    %cst_21 = arith.constant dense<0.000000e+00> : vector<16x128xf32>
    %53 = tpu.matmul %51, %52, %cst_21 {dimension_numbers = #tpu.dot_dimension_numbers<[1], [0], [0], [1], [0, 0, 1, 1], [], []>} : vector<16x128xbf16>, vector<128x128xbf16>, vector<16x128xf32> -> vector<16x128xf32>
    %c0_22 = arith.constant 0 : index
    %c0_23 = arith.constant 0 : index
    %54 = vector.load %arg7[%c0_22, %c0_23] : memref<1x128xf32, #tpu.memory_space<vmem>>, vector<1x128xf32>
    %55 = vector.broadcast %54 : vector<1x128xf32> to vector<16x128xf32>
    %56 = arith.addf %53, %55 : vector<16x128xf32>
    %57 = arith.truncf %30 : vector<16x128xf32> to vector<16x128xbf16>
    %c0_24 = arith.constant 0 : index
    %c0_25 = arith.constant 0 : index
    %58 = vector.load %arg8[%c0_24, %c0_25] : memref<128x128xbf16, #tpu.memory_space<vmem>>, vector<128x128xbf16>
    %cst_26 = arith.constant dense<0.000000e+00> : vector<16x128xf32>
    %59 = tpu.matmul %57, %58, %cst_26 {dimension_numbers = #tpu.dot_dimension_numbers<[1], [0], [0], [1], [0, 0, 1, 1], [], []>} : vector<16x128xbf16>, vector<128x128xbf16>, vector<16x128xf32> -> vector<16x128xf32>
    %60 = arith.mulf %30, %30 : vector<16x128xf32>
    %cst_27 = arith.constant dense<0.000000e+00> : vector<16xf32>
    %61 = vector.multi_reduction <add>, %60, %cst_27 [1] : vector<16x128xf32> to vector<16xf32>
    %62 = vector.shape_cast %61 : vector<16xf32> to vector<16x1xf32>
    %cst_28 = arith.constant 2.000000e+00 : f32
    %63 = vector.broadcast %cst_28 : f32 to vector<16x128xf32>
    %64 = arith.mulf %63, %59 : vector<16x128xf32>
    %65 = vector.broadcast %62 : vector<16x1xf32> to vector<16x128xf32>
    %66 = arith.subf %65, %64 : vector<16x128xf32>
    %c0_29 = arith.constant 0 : index
    %c0_30 = arith.constant 0 : index
    %67 = vector.load %arg9[%c0_29, %c0_30] : memref<1x128xf32, #tpu.memory_space<vmem>>, vector<1x128xf32>
    %68 = vector.broadcast %67 : vector<1x128xf32> to vector<16x128xf32>
    %69 = arith.addf %66, %68 : vector<16x128xf32>
    %cst_31 = arith.constant dense<0x7F800000> : vector<16xf32>
    %70 = vector.multi_reduction <minimumf>, %69, %cst_31 [1] : vector<16x128xf32> to vector<16xf32>
    %71 = vector.shape_cast %70 : vector<16xf32> to vector<16x1xf32>
    %cst_32 = arith.constant 0.000000e+00 : f32
    %72 = vector.broadcast %cst_32 : f32 to vector<16x1xf32>
    %73 = arith.maximumf %71, %72 : vector<16x1xf32>
    %cst_33 = arith.constant dense<0xFF800000> : vector<16xf32>
    %74 = vector.multi_reduction <maximumf>, %56, %cst_33 [1] : vector<16x128xf32> to vector<16xf32>
    %75 = vector.shape_cast %74 : vector<16xf32> to vector<16x1xf32>
    %76 = vector.broadcast %75 : vector<16x1xf32> to vector<16x128xf32>
    %77 = arith.subf %56, %76 : vector<16x128xf32>
    %78 = math.exp %77 : vector<16x128xf32>
    %cst_34 = arith.constant dense<0.000000e+00> : vector<16xf32>
    %79 = vector.multi_reduction <add>, %78, %cst_34 [1] : vector<16x128xf32> to vector<16xf32>
    %80 = vector.shape_cast %79 : vector<16xf32> to vector<16x1xf32>
    %81 = math.log %80 : vector<16x1xf32>
    %82 = arith.addf %75, %81 : vector<16x1xf32>
    %83 = vector.broadcast %71 : vector<16x1xf32> to vector<16x128xf32>
    %84 = arith.cmpf oeq, %69, %83 : vector<16x128xf32>
    %cst_35 = arith.constant 0xFF800000 : f32
    %85 = vector.broadcast %cst_35 : f32 to vector<16x128xf32>
    %86 = arith.select %84, %56, %85 : vector<16x128xi1>, vector<16x128xf32>
    %cst_36 = arith.constant dense<0xFF800000> : vector<16xf32>
    %87 = vector.multi_reduction <maximumf>, %86, %cst_36 [1] : vector<16x128xf32> to vector<16xf32>
    %88 = vector.shape_cast %87 : vector<16xf32> to vector<16x1xf32>
    %89 = arith.subf %82, %88 : vector<16x1xf32>
    %90 = arith.mulf %89, %2 : vector<16x1xf32>
    %91 = arith.mulf %90, %10 : vector<16x1xf32>
    %92 = arith.truncf %31 : vector<16x128xf32> to vector<16x128xbf16>
    %c0_37 = arith.constant 0 : index
    %c0_38 = arith.constant 0 : index
    %93 = vector.load %arg10[%c0_37, %c0_38] : memref<128x128xbf16, #tpu.memory_space<vmem>>, vector<128x128xbf16>
    %cst_39 = arith.constant dense<0.000000e+00> : vector<16x128xf32>
    %94 = tpu.matmul %92, %93, %cst_39 {dimension_numbers = #tpu.dot_dimension_numbers<[1], [0], [0], [1], [0, 0, 1, 1], [], []>} : vector<16x128xbf16>, vector<128x128xbf16>, vector<16x128xf32> -> vector<16x128xf32>
    %c0_40 = arith.constant 0 : index
    %c0_41 = arith.constant 0 : index
    %95 = vector.load %arg11[%c0_40, %c0_41] : memref<1x128xf32, #tpu.memory_space<vmem>>, vector<1x128xf32>
    %96 = vector.broadcast %95 : vector<1x128xf32> to vector<16x128xf32>
    %97 = arith.addf %94, %96 : vector<16x128xf32>
    %98 = arith.mulf %50, %50 : vector<16x128xf32>
    %cst_42 = arith.constant dense<0.000000e+00> : vector<16xf32>
    %99 = vector.multi_reduction <add>, %98, %cst_42 [1] : vector<16x128xf32> to vector<16xf32>
    %100 = vector.shape_cast %99 : vector<16xf32> to vector<16x1xf32>
    %cst_43 = arith.constant 9.99999996E-13 : f32
    %101 = vector.broadcast %cst_43 : f32 to vector<16x1xf32>
    %102 = arith.addf %100, %101 : vector<16x1xf32>
    %103 = math.rsqrt %102 : vector<16x1xf32>
    %104 = vector.broadcast %103 : vector<16x1xf32> to vector<16x128xf32>
    %105 = arith.mulf %50, %104 : vector<16x128xf32>
    %106 = arith.mulf %97, %97 : vector<16x128xf32>
    %cst_44 = arith.constant dense<0.000000e+00> : vector<16xf32>
    %107 = vector.multi_reduction <add>, %106, %cst_44 [1] : vector<16x128xf32> to vector<16xf32>
    %108 = vector.shape_cast %107 : vector<16xf32> to vector<16x1xf32>
    %cst_45 = arith.constant 9.99999996E-13 : f32
    %109 = vector.broadcast %cst_45 : f32 to vector<16x1xf32>
    %110 = arith.addf %108, %109 : vector<16x1xf32>
    %111 = math.rsqrt %110 : vector<16x1xf32>
    %112 = vector.broadcast %111 : vector<16x1xf32> to vector<16x128xf32>
    %113 = arith.mulf %97, %112 : vector<16x128xf32>
    %114 = arith.mulf %105, %113 : vector<16x128xf32>
    %cst_46 = arith.constant dense<0.000000e+00> : vector<16xf32>
    %115 = vector.multi_reduction <add>, %114, %cst_46 [1] : vector<16x128xf32> to vector<16xf32>
    %116 = vector.shape_cast %115 : vector<16xf32> to vector<16x1xf32>
    %117 = vector.shape_cast %91 : vector<16x1xf32> to vector<1x16x1xf32>
    %cst_47 = arith.constant dense<0.000000e+00> : vector<1xf32>
    %118 = vector.multi_reduction <add>, %117, %cst_47 [1, 2] : vector<1x16x1xf32> to vector<1xf32>
    %119 = vector.shape_cast %118 : vector<1xf32> to vector<1x1x1xf32>
    %120 = vector.extract %119[0, 0, 0] : f32 from vector<1x1x1xf32>
    %121 = arith.mulf %2, %10 : vector<16x1xf32>
    %122 = vector.shape_cast %121 : vector<16x1xf32> to vector<1x16x1xf32>
    %cst_48 = arith.constant dense<0.000000e+00> : vector<1xf32>
    %123 = vector.multi_reduction <add>, %122, %cst_48 [1, 2] : vector<1x16x1xf32> to vector<1xf32>
    %124 = vector.shape_cast %123 : vector<1xf32> to vector<1x1x1xf32>
    %125 = vector.extract %124[0, 0, 0] : f32 from vector<1x1x1xf32>
    %126 = arith.mulf %73, %10 : vector<16x1xf32>
    %127 = vector.shape_cast %126 : vector<16x1xf32> to vector<1x16x1xf32>
    %cst_49 = arith.constant dense<0.000000e+00> : vector<1xf32>
    %128 = vector.multi_reduction <add>, %127, %cst_49 [1, 2] : vector<1x16x1xf32> to vector<1xf32>
    %129 = vector.shape_cast %128 : vector<1xf32> to vector<1x1x1xf32>
    %130 = vector.extract %129[0, 0, 0] : f32 from vector<1x1x1xf32>
    %cst_50 = arith.constant 1.000000e+00 : f32
    %131 = vector.broadcast %cst_50 : f32 to vector<16x1xf32>
    %132 = arith.subf %131, %116 : vector<16x1xf32>
    %133 = arith.mulf %132, %10 : vector<16x1xf32>
    %134 = vector.shape_cast %133 : vector<16x1xf32> to vector<1x16x1xf32>
    %cst_51 = arith.constant dense<0.000000e+00> : vector<1xf32>
    %135 = vector.multi_reduction <add>, %134, %cst_51 [1, 2] : vector<1x16x1xf32> to vector<1xf32>
    %136 = vector.shape_cast %135 : vector<1xf32> to vector<1x1x1xf32>
    %137 = vector.extract %136[0, 0, 0] : f32 from vector<1x1x1xf32>
    %138 = tpu.iota {dimensions = array<i32: 1>} : vector<8x128xi32>
    %c0_i32 = arith.constant 0 : i32
    %139 = vector.broadcast %c0_i32 : i32 to vector<8x128xi32>
    %140 = arith.cmpi eq, %138, %139 : vector<8x128xi32>
    %cst_52 = arith.constant 0.000000e+00 : f32
    %141 = vector.broadcast %120 : f32 to vector<8x128xf32>
    %142 = vector.broadcast %cst_52 : f32 to vector<8x128xf32>
    %143 = arith.select %140, %141, %142 : vector<8x128xi1>, vector<8x128xf32>
    %c1_i32 = arith.constant 1 : i32
    %144 = vector.broadcast %c1_i32 : i32 to vector<8x128xi32>
    %145 = arith.cmpi eq, %138, %144 : vector<8x128xi32>
    %146 = vector.broadcast %125 : f32 to vector<8x128xf32>
    %147 = arith.select %145, %146, %143 : vector<8x128xi1>, vector<8x128xf32>
    %c2_i32 = arith.constant 2 : i32
    %148 = vector.broadcast %c2_i32 : i32 to vector<8x128xi32>
    %149 = arith.cmpi eq, %138, %148 : vector<8x128xi32>
    %150 = vector.broadcast %130 : f32 to vector<8x128xf32>
    %151 = arith.select %149, %150, %147 : vector<8x128xi1>, vector<8x128xf32>
    %c3_i32 = arith.constant 3 : i32
    %152 = vector.broadcast %c3_i32 : i32 to vector<8x128xi32>
    %153 = arith.cmpi eq, %138, %152 : vector<8x128xi32>
    %154 = vector.broadcast %137 : f32 to vector<8x128xf32>
    %155 = arith.select %153, %154, %151 : vector<8x128xi1>, vector<8x128xf32>
    %c0_53 = arith.constant 0 : index
    %c0_54 = arith.constant 0 : index
    %156 = vector.load %arg12[%c0_53, %c0_54] : memref<8x128xf32, #tpu.memory_space<vmem>>, vector<8x128xf32>
    tpu.vector_store %arg12[%c0_53, %c0_54], %155 {strides = array<i32>} : memref<8x128xf32, #tpu.memory_space<vmem>>, vector<8x128xf32>,
    return
  }
  func.func @transform_0(%arg0: i32) -> (i32, i32) {
    %c0_i32 = arith.constant 0 : i32
    %c0_i32_0 = arith.constant 0 : i32
    return %arg0, %c0_i32 : i32, i32
  }
  func.func @transform_1(%arg0: i32) -> (i32, i32) {
    %c0_i32 = arith.constant 0 : i32
    %c0_i32_0 = arith.constant 0 : i32
    %c0_i32_1 = arith.constant 0 : i32
    return %c0_i32, %c0_i32_0 : i32, i32
  }
  func.func @transform_2(%arg0: i32) -> (i32, i32) {
    %c0_i32 = arith.constant 0 : i32
    %c0_i32_0 = arith.constant 0 : i32
    %c0_i32_1 = arith.constant 0 : i32
    return %c0_i32, %c0_i32_0 : i32, i32
  }
  func.func @transform_3(%arg0: i32) -> (i32, i32) {
    %c0_i32 = arith.constant 0 : i32
    %c0_i32_0 = arith.constant 0 : i32
    %c0_i32_1 = arith.constant 0 : i32
    return %c0_i32, %c0_i32_0 : i32, i32
  }
  func.func @transform_4(%arg0: i32) -> (i32, i32) {
    %c0_i32 = arith.constant 0 : i32
    %c0_i32_0 = arith.constant 0 : i32
    %c0_i32_1 = arith.constant 0 : i32
    return %c0_i32, %c0_i32_0 : i32, i32
  }
  func.func @transform_5(%arg0: i32) -> (i32, i32) {
    %c0_i32 = arith.constant 0 : i32
    %c0_i32_0 = arith.constant 0 : i32
    %c0_i32_1 = arith.constant 0 : i32
    return %c0_i32, %c0_i32_0 : i32, i32
  }
  func.func @transform_6(%arg0: i32) -> (i32, i32) {
    %c0_i32 = arith.constant 0 : i32
    %c0_i32_0 = arith.constant 0 : i32
    %c0_i32_1 = arith.constant 0 : i32
    return %c0_i32, %c0_i32_0 : i32, i32
  }
  func.func @transform_7(%arg0: i32) -> (i32, i32) {
    %c0_i32 = arith.constant 0 : i32
    %c0_i32_0 = arith.constant 0 : i32
    %c0_i32_1 = arith.constant 0 : i32
    return %c0_i32, %c0_i32_0 : i32, i32
  }
  func.func @transform_8(%arg0: i32) -> (i32, i32) {
    %c0_i32 = arith.constant 0 : i32
    %c0_i32_0 = arith.constant 0 : i32
    %c0_i32_1 = arith.constant 0 : i32
    return %c0_i32, %c0_i32_0 : i32, i32
  }
  func.func @transform_9(%arg0: i32) -> (i32, i32) {
    %c0_i32 = arith.constant 0 : i32
    %c0_i32_0 = arith.constant 0 : i32
    %c0_i32_1 = arith.constant 0 : i32
    return %c0_i32, %c0_i32_0 : i32, i32
  }
  func.func @transform_10(%arg0: i32) -> (i32, i32) {
    %c0_i32 = arith.constant 0 : i32
    %c0_i32_0 = arith.constant 0 : i32
    %c0_i32_1 = arith.constant 0 : i32
    return %c0_i32, %c0_i32_0 : i32, i32
  }
  func.func @transform_11(%arg0: i32) -> (i32, i32) {
    %c0_i32 = arith.constant 0 : i32
    %c0_i32_0 = arith.constant 0 : i32
    return %arg0, %c0_i32 : i32, i32
  }
}

module attributes {stable_mosaic.version = 11 : i64} {
  func.func @_fused_bridle_kernel(%arg0: i32, %arg1: memref<16x128xbf16, #tpu.memory_space<vmem>>, %arg2: memref<128x384xbf16, #tpu.memory_space<vmem>>, %arg3: memref<1x384xf32, #tpu.memory_space<vmem>>, %arg4: memref<128x128xbf16, #tpu.memory_space<vmem>>, %arg5: memref<1x128xf32, #tpu.memory_space<vmem>>, %arg6: memref<128x128xbf16, #tpu.memory_space<vmem>>, %arg7: memref<1x128xf32, #tpu.memory_space<vmem>>, %arg8: memref<128x128xbf16, #tpu.memory_space<vmem>>, %arg9: memref<1x128xf32, #tpu.memory_space<vmem>>, %arg10: memref<128x128xbf16, #tpu.memory_space<vmem>>, %arg11: memref<1x128xf32, #tpu.memory_space<vmem>>, %arg12: memref<8x128xf32, #tpu.memory_space<vmem>>) attributes {dimension_semantics = [#tpu.dimension_semantics<parallel>], iteration_bounds = array<i64: 1>, scalar_prefetch = 0 : i64, scratch_operands = 0 : i64, tpu.core_type = #tpu.core_type<tc>, window_params = [{transform_indices = @transform_0, window_bounds = array<i64: 16, 128>}, {pipeline_mode = #tpu.pipeline_mode<synchronous>, transform_indices = @transform_1, window_bounds = array<i64: 128, 384>}, {pipeline_mode = #tpu.pipeline_mode<synchronous>, transform_indices = @transform_2, window_bounds = array<i64: 1, 384>}, {pipeline_mode = #tpu.pipeline_mode<synchronous>, transform_indices = @transform_3, window_bounds = array<i64: 128, 128>}, {pipeline_mode = #tpu.pipeline_mode<synchronous>, transform_indices = @transform_4, window_bounds = array<i64: 1, 128>}, {pipeline_mode = #tpu.pipeline_mode<synchronous>, transform_indices = @transform_5, window_bounds = array<i64: 128, 128>}, {pipeline_mode = #tpu.pipeline_mode<synchronous>, transform_indices = @transform_6, window_bounds = array<i64: 1, 128>}, {pipeline_mode = #tpu.pipeline_mode<synchronous>, transform_indices = @transform_7, window_bounds = array<i64: 128, 128>}, {pipeline_mode = #tpu.pipeline_mode<synchronous>, transform_indices = @transform_8, window_bounds = array<i64: 1, 128>}, {pipeline_mode = #tpu.pipeline_mode<synchronous>, transform_indices = @transform_9, window_bounds = array<i64: 128, 128>}, {pipeline_mode = #tpu.pipeline_mode<synchronous>, transform_indices = @transform_10, window_bounds = array<i64: 1, 128>}, {transform_indices = @transform_11, window_bounds = array<i64: 8, 128>}]} {
    %c0 = arith.constant 0 : index
    %c0_0 = arith.constant 0 : index
    %0 = vector.load %arg1[%c0, %c0_0] : memref<16x128xbf16, #tpu.memory_space<vmem>>, vector<16x128xbf16>
    %1 = vector.extract_strided_slice %0 {offsets = [0, 96], sizes = [16, 1], strides = [1, 1]} : vector<16x128xbf16> to vector<16x1xbf16>
    %2 = arith.extf %1 : vector<16x1xbf16> to vector<16x1xf32>
    %3 = tpu.iota {dimensions = array<i32: 0>} : vector<16x1xi32>
    %c16_i32 = arith.constant 16 : i32
    %4 = arith.muli %arg0, %c16_i32 : i32
    %5 = vector.broadcast %4 : i32 to vector<16x1xi32>
    %6 = arith.addi %3, %5 : vector<16x1xi32>
    %c16_i32_1 = arith.constant 16 : i32
    %7 = vector.broadcast %c16_i32_1 : i32 to vector<16x1xi32>
    %8 = arith.cmpi slt, %6, %7 : vector<16x1xi32>
    %9 = arith.extui %8 : vector<16x1xi1> to vector<16x1xi32>
    %10 = arith.sitofp %9 : vector<16x1xi32> to vector<16x1xf32>
    %c0_2 = arith.constant 0 : index
    %c0_3 = arith.constant 0 : index
    %11 = vector.load %arg2[%c0_2, %c0_3] : memref<128x384xbf16, #tpu.memory_space<vmem>>, vector<128x384xbf16>
    %cst = arith.constant dense<0.000000e+00> : vector<16x384xf32>
    %12 = tpu.matmul %0, %11, %cst {dimension_numbers = #tpu.dot_dimension_numbers<[1], [0], [0], [1], [0, 0, 1, 1], [], []>} : vector<16x128xbf16>, vector<128x384xbf16>, vector<16x384xf32> -> vector<16x384xf32>
    %c0_4 = arith.constant 0 : index
    %c0_5 = arith.constant 0 : index
    %13 = vector.load %arg3[%c0_4, %c0_5] : memref<1x384xf32, #tpu.memory_space<vmem>>, vector<1x384xf32>
    %14 = vector.broadcast %13 : vector<1x384xf32> to vector<16x384xf32>
    %15 = arith.addf %12, %14 : vector<16x384xf32>
    %16 = arith.mulf %15, %15 : vector<16x384xf32>
    %17 = arith.mulf %15, %16 : vector<16x384xf32>
    %cst_6 = arith.constant 4.471500e-02 : f32
    %18 = vector.broadcast %cst_6 : f32 to vector<16x384xf32>
    %19 = arith.mulf %18, %17 : vector<16x384xf32>
    %20 = arith.addf %15, %19 : vector<16x384xf32>
    %cst_7 = arith.constant 0.797884583 : f32
    %21 = vector.broadcast %cst_7 : f32 to vector<16x384xf32>
    %22 = arith.mulf %21, %20 : vector<16x384xf32>
    %23 = math.tanh %22 : vector<16x384xf32>
    %cst_8 = arith.constant 1.000000e+00 : f32
    %24 = vector.broadcast %cst_8 : f32 to vector<16x384xf32>
    %25 = arith.addf %24, %23 : vector<16x384xf32>
    %cst_9 = arith.constant 5.000000e-01 : f32
    %26 = vector.broadcast %cst_9 : f32 to vector<16x384xf32>
    %27 = arith.mulf %26, %25 : vector<16x384xf32>
    %28 = arith.mulf %15, %27 : vector<16x384xf32>
    %29 = vector.extract_strided_slice %28 {offsets = [0, 0], sizes = [16, 128], strides = [1, 1]} : vector<16x384xf32> to vector<16x128xf32>
    %30 = vector.extract_strided_slice %28 {offsets = [0, 128], sizes = [16, 128], strides = [1, 1]} : vector<16x384xf32> to vector<16x128xf32>
    %31 = vector.extract_strided_slice %28 {offsets = [0, 256], sizes = [16, 128], strides = [1, 1]} : vector<16x384xf32> to vector<16x128xf32>
    %32 = arith.truncf %29 : vector<16x128xf32> to vector<16x128xbf16>
    %c0_10 = arith.constant 0 : index
    %c0_11 = arith.constant 0 : index
    %33 = vector.load %arg4[%c0_10, %c0_11] : memref<128x128xbf16, #tpu.memory_space<vmem>>, vector<128x128xbf16>
    %cst_12 = arith.constant dense<0.000000e+00> : vector<16x128xf32>
    %34 = tpu.matmul %32, %33, %cst_12 {dimension_numbers = #tpu.dot_dimension_numbers<[1], [0], [0], [1], [0, 0, 1, 1], [], []>} : vector<16x128xbf16>, vector<128x128xbf16>, vector<16x128xf32> -> vector<16x128xf32>
    %c0_13 = arith.constant 0 : index
    %c0_14 = arith.constant 0 : index
    %35 = vector.load %arg5[%c0_13, %c0_14] : memref<1x128xf32, #tpu.memory_space<vmem>>, vector<1x128xf32>
    %36 = vector.broadcast %35 : vector<1x128xf32> to vector<16x128xf32>
    %37 = arith.addf %34, %36 : vector<16x128xf32>
    %38 = arith.mulf %37, %37 : vector<16x128xf32>
    %39 = arith.mulf %37, %38 : vector<16x128xf32>
    %cst_15 = arith.constant 4.471500e-02 : f32
    %40 = vector.broadcast %cst_15 : f32 to vector<16x128xf32>
    %41 = arith.mulf %40, %39 : vector<16x128xf32>
    %42 = arith.addf %37, %41 : vector<16x128xf32>
    %cst_16 = arith.constant 0.797884583 : f32
    %43 = vector.broadcast %cst_16 : f32 to vector<16x128xf32>
    %44 = arith.mulf %43, %42 : vector<16x128xf32>
    %45 = math.tanh %44 : vector<16x128xf32>
    %cst_17 = arith.constant 1.000000e+00 : f32
    %46 = vector.broadcast %cst_17 : f32 to vector<16x128xf32>
    %47 = arith.addf %46, %45 : vector<16x128xf32>
    %cst_18 = arith.constant 5.000000e-01 : f32
    %48 = vector.broadcast %cst_18 : f32 to vector<16x128xf32>
    %49 = arith.mulf %48, %47 : vector<16x128xf32>
    %50 = arith.mulf %37, %49 : vector<16x128xf32>
    %51 = arith.truncf %50 : vector<16x128xf32> to vector<16x128xbf16>
    %c0_19 = arith.constant 0 : index
    %c0_20 = arith.constant 0 : index
    %52 = vector.load %arg6[%c0_19, %c0_20] : memref<128x128xbf16, #tpu.memory_space<vmem>>, vector<128x128xbf16>
    %cst_21 = arith.constant dense<0.000000e+00> : vector<16x128xf32>
    %53 = tpu.matmul %51, %52, %cst_21 {dimension_numbers = #tpu.dot_dimension_numbers<[1], [0], [0], [1], [0, 0, 1, 1], [], []>} : vector<16x128xbf16>, vector<128x128xbf16>, vector<16x128xf32> -> vector<16x128xf32>
    %c0_22 = arith.constant 0 : index
    %c0_23 = arith.constant 0 : index
    %54 = vector.load %arg7[%c0_22, %c0_23] : memref<1x128xf32, #tpu.memory_space<vmem>>, vector<1x128xf32>
    %55 = vector.broadcast %54 : vector<1x128xf32> to vector<16x128xf32>
    %56 = arith.addf %53, %55 : vector<16x128xf32>
    %57 = arith.truncf %30 : vector<16x128xf32> to vector<16x128xbf16>
    %c0_24 = arith.constant 0 : index
    %c0_25 = arith.constant 0 : index
    %58 = vector.load %arg8[%c0_24, %c0_25] : memref<128x128xbf16, #tpu.memory_space<vmem>>, vector<128x128xbf16>
    %cst_26 = arith.constant dense<0.000000e+00> : vector<16x128xf32>
    %59 = tpu.matmul %57, %58, %cst_26 {dimension_numbers = #tpu.dot_dimension_numbers<[1], [0], [0], [1], [0, 0, 1, 1], [], []>} : vector<16x128xbf16>, vector<128x128xbf16>, vector<16x128xf32> -> vector<16x128xf32>
    %60 = arith.mulf %30, %30 : vector<16x128xf32>
    %cst_27 = arith.constant dense<0.000000e+00> : vector<16xf32>
    %61 = vector.multi_reduction <add>, %60, %cst_27 [1] : vector<16x128xf32> to vector<16xf32>
    %62 = vector.shape_cast %61 : vector<16xf32> to vector<16x1xf32>
    %cst_28 = arith.constant 2.000000e+00 : f32
    %63 = vector.broadcast %cst_28 : f32 to vector<16x128xf32>
    %64 = arith.mulf %63, %59 : vector<16x128xf32>
    %65 = vector.broadcast %62 : vector<16x1xf32> to vector<16x128xf32>
    %66 = arith.subf %65, %64 : vector<16x128xf32>
    %c0_29 = arith.constant 0 : index
    %c0_30 = arith.constant 0 : index
    %67 = vector.load %arg9[%c0_29, %c0_30] : memref<1x128xf32, #tpu.memory_space<vmem>>, vector<1x128xf32>
    %68 = vector.broadcast %67 : vector<1x128xf32> to vector<16x128xf32>
    %69 = arith.addf %66, %68 : vector<16x128xf32>
    %cst_31 = arith.constant dense<0x7F800000> : vector<16xf32>
    %70 = vector.multi_reduction <minimumf>, %69, %cst_31 [1] : vector<16x128xf32> to vector<16xf32>
    %71 = vector.shape_cast %70 : vector<16xf32> to vector<16x1xf32>
    %cst_32 = arith.constant 0.000000e+00 : f32
    %72 = vector.broadcast %cst_32 : f32 to vector<16x1xf32>
    %73 = arith.maximumf %71, %72 : vector<16x1xf32>
    %cst_33 = arith.constant dense<0xFF800000> : vector<16xf32>
    %74 = vector.multi_reduction <maximumf>, %56, %cst_33 [1] : vector<16x128xf32> to vector<16xf32>
    %75 = vector.shape_cast %74 : vector<16xf32> to vector<16x1xf32>
    %76 = vector.broadcast %75 : vector<16x1xf32> to vector<16x128xf32>
    %77 = arith.subf %56, %76 : vector<16x128xf32>
    %78 = math.exp %77 : vector<16x128xf32>
    %cst_34 = arith.constant dense<0.000000e+00> : vector<16xf32>
    %79 = vector.multi_reduction <add>, %78, %cst_34 [1] : vector<16x128xf32> to vector<16xf32>
    %80 = vector.shape_cast %79 : vector<16xf32> to vector<16x1xf32>
    %81 = math.log %80 : vector<16x1xf32>
    %82 = arith.addf %75, %81 : vector<16x1xf32>
    %83 = vector.broadcast %71 : vector<16x1xf32> to vector<16x128xf32>
    %84 = arith.cmpf oeq, %69, %83 : vector<16x128xf32>
    %cst_35 = arith.constant 0xFF800000 : f32
    %85 = vector.broadcast %cst_35 : f32 to vector<16x128xf32>
    %86 = arith.select %84, %56, %85 : vector<16x128xi1>, vector<16x128xf32>
    %cst_36 = arith.constant dense<0xFF800000> : vector<16xf32>
    %87 = vector.multi_reduction <maximumf>, %86, %cst_36 [1] : vector<16x128xf32> to vector<16xf32>
    %88 = vector.shape_cast %87 : vector<16xf32> to vector<16x1xf32>
    %89 = arith.subf %82, %88 : vector<16x1xf32>
    %90 = arith.mulf %89, %2 : vector<16x1xf32>
    %91 = arith.mulf %90, %10 : vector<16x1xf32>
    %92 = arith.truncf %31 : vector<16x128xf32> to vector<16x128xbf16>
    %c0_37 = arith.constant 0 : index
    %c0_38 = arith.constant 0 : index
    %93 = vector.load %arg10[%c0_37, %c0_38] : memref<128x128xbf16, #tpu.memory_space<vmem>>, vector<128x128xbf16>
    %cst_39 = arith.constant dense<0.000000e+00> : vector<16x128xf32>
    %94 = tpu.matmul %92, %93, %cst_39 {dimension_numbers = #tpu.dot_dimension_numbers<[1], [0], [0], [1], [0, 0, 1, 1], [], []>} : vector<16x128xbf16>, vector<128x128xbf16>, vector<16x128xf32> -> vector<16x128xf32>
    %c0_40 = arith.constant 0 : index
    %c0_41 = arith.constant 0 : index
    %95 = vector.load %arg11[%c0_40, %c0_41] : memref<1x128xf32, #tpu.memory_space<vmem>>, vector<1x128xf32>
    %96 = vector.broadcast %95 : vector<1x128xf32> to vector<16x128xf32>
    %97 = arith.addf %94, %96 : vector<16x128xf32>
    %98 = arith.mulf %50, %50 : vector<16x128xf32>
    %cst_42 = arith.constant dense<0.000000e+00> : vector<16xf32>
    %99 = vector.multi_reduction <add>, %98, %cst_42 [1] : vector<16x128xf32> to vector<16xf32>
    %100 = vector.shape_cast %99 : vector<16xf32> to vector<16x1xf32>
    %cst_43 = arith.constant 9.99999996E-13 : f32
    %101 = vector.broadcast %cst_43 : f32 to vector<16x1xf32>
    %102 = arith.addf %100, %101 : vector<16x1xf32>
    %103 = math.rsqrt %102 : vector<16x1xf32>
    %104 = vector.broadcast %103 : vector<16x1xf32> to vector<16x128xf32>
    %105 = arith.mulf %50, %104 : vector<16x128xf32>
    %106 = arith.mulf %97, %97 : vector<16x128xf32>
    %cst_44 = arith.constant dense<0.000000e+00> : vector<16xf32>
    %107 = vector.multi_reduction <add>, %106, %cst_44 [1] : vector<16x128xf32> to vector<16xf32>
    %108 = vector.shape_cast %107 : vector<16xf32> to vector<16x1xf32>
    %cst_45 = arith.constant 9.99999996E-13 : f32
    %109 = vector.broadcast %cst_45 : f32 to vector<16x1xf32>
    %110 = arith.addf %108, %109 : vector<16x1xf32>
    %111 = math.rsqrt %110 : vector<16x1xf32>
    %112 = vector.broadcast %111 : vector<16x1xf32> to vector<16x128xf32>
    %113 = arith.mulf %97, %112 : vector<16x128xf32>
    %114 = arith.mulf %105, %113 : vector<16x128xf32>
    %cst_46 = arith.constant dense<0.000000e+00> : vector<16xf32>
    %115 = vector.multi_reduction <add>, %114, %cst_46 [1] : vector<16x128xf32> to vector<16xf32>
    %116 = vector.shape_cast %115 : vector<16xf32> to vector<16x1xf32>
    %117 = vector.shape_cast %91 : vector<16x1xf32> to vector<1x16x1xf32>
    %cst_47 = arith.constant dense<0.000000e+00> : vector<1xf32>
    %118 = vector.multi_reduction <add>, %117, %cst_47 [1, 2] : vector<1x16x1xf32> to vector<1xf32>
    %119 = vector.shape_cast %118 : vector<1xf32> to vector<1x1x1xf32>
    %120 = vector.extract %119[0, 0, 0] : f32 from vector<1x1x1xf32>
    %121 = arith.mulf %2, %10 : vector<16x1xf32>
    %122 = vector.shape_cast %121 : vector<16x1xf32> to vector<1x16x1xf32>
    %cst_48 = arith.constant dense<0.000000e+00> : vector<1xf32>
    %123 = vector.multi_reduction <add>, %122, %cst_48 [1, 2] : vector<1x16x1xf32> to vector<1xf32>
    %124 = vector.shape_cast %123 : vector<1xf32> to vector<1x1x1xf32>
    %125 = vector.extract %124[0, 0, 0] : f32 from vector<1x1x1xf32>
    %126 = arith.mulf %73, %10 : vector<16x1xf32>
    %127 = vector.shape_cast %126 : vector<16x1xf32> to vector<1x16x1xf32>
    %cst_49 = arith.constant dense<0.000000e+00> : vector<1xf32>
    %128 = vector.multi_reduction <add>, %127, %cst_49 [1, 2] : vector<1x16x1xf32> to vector<1xf32>
    %129 = vector.shape_cast %128 : vector<1xf32> to vector<1x1x1xf32>
    %130 = vector.extract %129[0, 0, 0] : f32 from vector<1x1x1xf32>
    %cst_50 = arith.constant 1.000000e+00 : f32
    %131 = vector.broadcast %cst_50 : f32 to vector<16x1xf32>
    %132 = arith.subf %131, %116 : vector<16x1xf32>
    %133 = arith.mulf %132, %10 : vector<16x1xf32>
    %134 = vector.shape_cast %133 : vector<16x1xf32> to vector<1x16x1xf32>
    %cst_51 = arith.constant dense<0.000000e+00> : vector<1xf32>
    %135 = vector.multi_reduction <add>, %134, %cst_51 [1, 2] : vector<1x16x1xf32> to vector<1xf32>
    %136 = vector.shape_cast %135 : vector<1xf32> to vector<1x1x1xf32>
    %137 = vector.extract %136[0, 0, 0] : f32 from vector<1x1x1xf32>
    %138 = tpu.iota {dimensions = array<i32: 1>} : vector<8x128xi32>
    %c0_i32 = arith.constant 0 : i32
    %139 = vector.broadcast %c0_i32 : i32 to vector<8x128xi32>
    %140 = arith.cmpi eq, %138, %139 : vector<8x128xi32>
    %cst_52 = arith.constant 0.000000e+00 : f32
    %141 = vector.broadcast %120 : f32 to vector<8x128xf32>
    %142 = vector.broadcast %cst_52 : f32 to vector<8x128xf32>
    %143 = arith.select %140, %141, %142 : vector<8x128xi1>, vector<8x128xf32>
    %c1_i32 = arith.constant 1 : i32
    %144 = vector.broadcast %c1_i32 : i32 to vector<8x128xi32>
    %145 = arith.cmpi eq, %138, %144 : vector<8x128xi32>
    %146 = vector.broadcast %125 : f32 to vector<8x128xf32>
    %147 = arith.select %145, %146, %143 : vector<8x128xi1>, vector<8x128xf32>
    %c2_i32 = arith.constant 2 : i32
    %148 = vector.broadcast %c2_i32 : i32 to vector<8x128xi32>
    %149 = arith.cmpi eq, %138, %148 : vector<8x128xi32>
    %150 = vector.broadcast %130 : f32 to vector<8x128xf32>
    %151 = arith.select %149, %150, %147 : vector<8x128xi1>, vector<8x128xf32>
    %c3_i32 = arith.constant 3 : i32
    %152 = vector.broadcast %c3_i32 : i32 to vector<8x128xi32>
    %153 = arith.cmpi eq, %138, %152 : vector<8x128xi32>
    %154 = vector.broadcast %137 : f32 to vector<8x128xf32>
    %155 = arith.select %153, %154, %151 : vector<8x128xi1>, vector<8x128xf32>
    %c0_53 = arith.constant 0 : index
    %c0_54 = arith.constant 0 : index
    %156 = vector.load %arg12[%c0_53, %c0_54] : memref<8x128xf32, #tpu.memory_space<vmem>>, vector<8x128xf32>
    tpu.vector_store %arg12[%c0_53, %c0_54], %155 {strides = array<i32>} : memref<8x128xf32, #tpu.memory_space<vmem>>, vector<8x128xf32>,
    return
  }
  func.func @transform_0(%arg0: i32) -> (i32, i32) {
    %c0_i32 = arith.constant 0 : i32
    %c0_i32_0 = arith.constant 0 : i32
    return %arg0, %c0_i32 : i32, i32
  }
  func.func @transform_1(%arg0: i32) -> (i32, i32) {
    %c0_i32 = arith.constant 0 : i32
    %c0_i32_0 = arith.constant 0 : i32
    %c0_i32_1 = arith.constant 0 : i32
    return %c0_i32, %c0_i32_0 : i32, i32
  }
  func.func @transform_2(%arg0: i32) -> (i32, i32) {
    %c0_i32 = arith.constant 0 : i32
    %c0_i32_0 = arith.constant 0 : i32
    %c0_i32_1 = arith.constant 0 : i32
    return %c0_i32, %c0_i32_0 : i32, i32
  }
  func.func @transform_3(%arg0: i32) -> (i32, i32) {
    %c0_i32 = arith.constant 0 : i32
    %c0_i32_0 = arith.constant 0 : i32
    %c0_i32_1 = arith.constant 0 : i32
    return %c0_i32, %c0_i32_0 : i32, i32
  }
  func.func @transform_4(%arg0: i32) -> (i32, i32) {
    %c0_i32 = arith.constant 0 : i32
    %c0_i32_0 = arith.constant 0 : i32
    %c0_i32_1 = arith.constant 0 : i32
    return %c0_i32, %c0_i32_0 : i32, i32
  }
  func.func @transform_5(%arg0: i32) -> (i32, i32) {
    %c0_i32 = arith.constant 0 : i32
    %c0_i32_0 = arith.constant 0 : i32
    %c0_i32_1 = arith.constant 0 : i32
    return %c0_i32, %c0_i32_0 : i32, i32
  }
  func.func @transform_6(%arg0: i32) -> (i32, i32) {
    %c0_i32 = arith.constant 0 : i32
    %c0_i32_0 = arith.constant 0 : i32
    %c0_i32_1 = arith.constant 0 : i32
    return %c0_i32, %c0_i32_0 : i32, i32
  }
  func.func @transform_7(%arg0: i32) -> (i32, i32) {
    %c0_i32 = arith.constant 0 : i32
    %c0_i32_0 = arith.constant 0 : i32
    %c0_i32_1 = arith.constant 0 : i32
    return %c0_i32, %c0_i32_0 : i32, i32
  }
  func.func @transform_8(%arg0: i32) -> (i32, i32) {
    %c0_i32 = arith.constant 0 : i32
    %c0_i32_0 = arith.constant 0 : i32
    %c0_i32_1 = arith.constant 0 : i32
    return %c0_i32, %c0_i32_0 : i32, i32
  }
  func.func @transform_9(%arg0: i32) -> (i32, i32) {
    %c0_i32 = arith.constant 0 : i32
    %c0_i32_0 = arith.constant 0 : i32
    %c0_i32_1 = arith.constant 0 : i32
    return %c0_i32, %c0_i32_0 : i32, i32
  }
  func.func @transform_10(%arg0: i32) -> (i32, i32) {
    %c0_i32 = arith.constant 0 : i32
    %c0_i32_0 = arith.constant 0 : i32
    %c0_i32_1 = arith.constant 0 : i32
    return %c0_i32, %c0_i32_0 : i32, i32
  }
  func.func @transform_11(%arg0: i32) -> (i32, i32) {
    %c0_i32 = arith.constant 0 : i32
    %c0_i32_0 = arith.constant 0 : i32
    return %arg0, %c0_i32 : i32, i32
  }
}

</mosaic_0001>

<bundles_post_ra>
// kernel: tpu_custom_call.1
= control target key start
LH: loop header
LB: loop body
LE: loop exit
PB: predicated region body
PF: predicated region fallthrough
CT: control target
= control target key end

     0   :  { %16 = vsyncpa [#allocation3], 0  ;;  %s2139_s0 = inlined_call_operand.hbm [shape: bf16[16,128], index: 0, kind: input, shape index: {}]   ;;  %s2140_s1 = inlined_call_operand.hbm [shape: bf16[128,384], index: 1, kind: input, shape index: {}]   ;;  %s2141_s2 = inlined_call_operand.hbm [shape: f32[1,384], index: 2, kind: input, shape index: {}]   ;;  %s2142_s3 = inlined_call_operand.hbm [shape: bf16[128,128], index: 3, kind: input, shape index: {}]   ;;  %s2143_s4 = inlined_call_operand.hbm [shape: f32[1,128], index: 4, kind: input, shape index: {}]   ;;  %s2144_s5 = inlined_call_operand.hbm [shape: bf16[128,128], index: 5, kind: input, shape index: {}]   ;;  %s2145_s6 = inlined_call_operand.hbm [shape: f32[1,128], index: 6, kind: input, shape index: {}]   ;;  %s2146_s7 = inlined_call_operand.hbm [shape: bf16[128,128], index: 7, kind: input, shape index: {}]   ;;  %s2147_s8 = inlined_call_operand.hbm [shape: f32[1,128], index: 8, kind: input, shape index: {}]   ;;  %s2148_s9 = inlined_call_operand.hbm [shape: bf16[128,128], index: 9, kind: input, shape index: {}]   ;;  %s2149_s10 = inlined_call_operand.hbm [shape: f32[1,128], index: 10, kind: input, shape index: {}]   ;;  %s2150_s11 = inlined_call_operand.hbm [shape: f32[8,128], index: 11, kind: output, shape index: {}]  }
   0x1   :  { %17 = vsyncpa [#allocation6], 0 }
   0x2   :  { %18 = vsyncpa [#allocation9], 0 }
   0x3   :  { %19 = vsyncpa [#allocation12], 0 }
   0x4   :  { %20 = vsyncpa [#allocation15], 0 }
   0x5   :  { %21 = vsyncpa [#allocation18], 0 }
   0x6   :  { %22 = vsyncpa [#allocation4], 0  ;;  %s1792_s17 = smov [#allocation5]   ;;  %s1514_s21 = scalar_lea.hbm %s2140_s1, 3072 }
   0x7   :  { %s40_s18 = sshll.u32 %s1792_s17, 4  ;;  %p1515_p0 = scmp.ne.s32.totalorder %s2140_s1, %s1514_s21  ;;  %s41_s18 = int_to_ptr.vmem [resolvable:$true] %s40_s18 }
   0x8   :  { %p1518_p1 = scmp.lt.u32.totalorder %s1514_s21, %s2140_s1 }
   0xa   :  { %p1520_p2 = pnand %p1518_p1, %p1515_p0 }
   0xc   :  { %1523 = shalt.err (!%p1520_p2)
}
   0xd   :  { %s1524_s26 = scalar_lea.vmem %s41_s18, 3072  ;;  %p1529_p4 = scmp.lt.s32.totalorder %s41_s18, %s41_s18 }
   0xe   :  { %p1525_p3 = scmp.ne.s32.totalorder %s41_s18, %s1524_s26  ;;  %p1530_p5 = scmp.lt.s32.totalorder %s1524_s26, %s1524_s26 }
  0x10   :  { %p1531_p6 = por %p1530_p5, %p1529_p4 }
  0x12   :  { %p1532_p7 = pnand %p1531_p6, %p1525_p3 }
  0x14   :  { %1535 = shalt.err (!%p1532_p7)
}
  0x15   :  { %s1793_s27 = smov 192   ;;  %s1794_s28 = smov 12  }
  0x16   :  { %46 = dma.hbm_to_vmem [thread:$0]  %s2140_s1, 3072, %s41_s18, [#allocation6], %s1793_s27, %s1793_s27, %s1794_s28  }
  0x17   :  { %s1795_s12 = smov [#allocation8]   ;;  %s1796_s14 = smov [#allocation11]  }
  0x18   :  { %s62_s13 = sshll.u32 %s1795_s12, 4  ;;  %s84_s15 = sshll.u32 %s1796_s14, 4  ;;  %s63_s13 = int_to_ptr.vmem [resolvable:$true] %s62_s13  ;;  %s85_s15 = int_to_ptr.vmem [resolvable:$true] %s84_s15 }
  0x19   :  { %s1536_s19 = scalar_lea.hbm %s2142_s3, 1024 }
  0x1a   :  { %p1537_p8 = scmp.ne.s32.totalorder %s2142_s3, %s1536_s19  ;;  %p1540_p9 = scmp.lt.u32.totalorder %s1536_s19, %s2142_s3 }
  0x1c   :  { %p1542_p10 = pnand %p1540_p9, %p1537_p8 }
  0x1e   :  { %1545 = shalt.err (!%p1542_p10)
}
  0x1f   :  { %s1546_s1 = scalar_lea.vmem %s63_s13, 1024  ;;  %p1551_p12 = scmp.lt.s32.totalorder %s63_s13, %s63_s13 }
  0x20   :  { %p1547_p11 = scmp.ne.s32.totalorder %s63_s13, %s1546_s1  ;;  %p1552_p13 = scmp.lt.s32.totalorder %s1546_s1, %s1546_s1 }
  0x22   :  { %p1553_p0 = por %p1552_p13, %p1551_p12 }
  0x24   :  { %p1554_p1 = pnand %p1553_p0, %p1547_p11 }
  0x26   :  { %1557 = shalt.err (!%p1554_p1)
}
  0x27   :  { %s1797_s18 = smov 64   ;;  %s1798_s24 = smov 4  }
  0x28   :  { %68 = dma.hbm_to_vmem [thread:$0]  %s2142_s3, 1024, %s63_s13, [#allocation9], %s1797_s18, %s1797_s18, %s1798_s24  }
  0x29   :  { %s1558_s29 = scalar_lea.hbm %s2144_s5, 1024 }
  0x2a   :  { %p1559_p2 = scmp.ne.s32.totalorder %s2144_s5, %s1558_s29  ;;  %p1562_p3 = scmp.lt.u32.totalorder %s1558_s29, %s2144_s5 }
  0x2c   :  { %p1564_p4 = pnand %p1562_p3, %p1559_p2 }
  0x2e   :  { %1567 = shalt.err (!%p1564_p4)
}
  0x2f   :  { %s1568_s17 = scalar_lea.vmem %s85_s15, 1024  ;;  %p1573_p6 = scmp.lt.s32.totalorder %s85_s15, %s85_s15 }
  0x30   :  { %p1569_p5 = scmp.ne.s32.totalorder %s85_s15, %s1568_s17  ;;  %p1574_p7 = scmp.lt.s32.totalorder %s1568_s17, %s1568_s17 }
  0x32   :  { %p1575_p8 = por %p1574_p7, %p1573_p6 }
  0x34   :  { %p1576_p9 = pnand %p1575_p8, %p1569_p5 }
  0x36   :  { %1579 = shalt.err (!%p1576_p9)
}
  0x37   :  { %90 = dma.hbm_to_vmem [thread:$0]  %s2144_s5, 1024, %s85_s15, [#allocation12], %s1797_s18, %s1797_s18, %s1798_s24  }
  0x38   :  { %s1799_s19 = smov [#allocation14]   ;;  %s1800_s21 = smov [#allocation17]  }
  0x39   :  { %s106_s20 = sshll.u32 %s1799_s19, 4  ;;  %s128_s22 = sshll.u32 %s1800_s21, 4  ;;  %s107_s20 = int_to_ptr.vmem [resolvable:$true] %s106_s20  ;;  %s129_s22 = int_to_ptr.vmem [resolvable:$true] %s128_s22 }
  0x3a   :  { %s1580_s25 = scalar_lea.hbm %s2146_s7, 1024 }
  0x3b   :  { %p1581_p10 = scmp.ne.s32.totalorder %s2146_s7, %s1580_s25  ;;  %p1584_p11 = scmp.lt.u32.totalorder %s1580_s25, %s2146_s7 }
  0x3d   :  { %p1586_p12 = pnand %p1584_p11, %p1581_p10 }
  0x3f   :  { %1589 = shalt.err (!%p1586_p12)
}
  0x40   :  { %s1590_s5 = scalar_lea.vmem %s107_s20, 1024  ;;  %p1595_p0 = scmp.lt.s32.totalorder %s107_s20, %s107_s20 }
  0x41   :  { %p1591_p13 = scmp.ne.s32.totalorder %s107_s20, %s1590_s5  ;;  %p1596_p1 = scmp.lt.s32.totalorder %s1590_s5, %s1590_s5 }
  0x43   :  { %p1597_p2 = por %p1596_p1, %p1595_p0 }
  0x45   :  { %p1598_p3 = pnand %p1597_p2, %p1591_p13 }
  0x47   :  { %1601 = shalt.err (!%p1598_p3)
}
  0x48   :  { %112 = dma.hbm_to_vmem [thread:$0]  %s2146_s7, 1024, %s107_s20, [#allocation15], %s1797_s18, %s1797_s18, %s1798_s24  }
  0x49   :  { %s1602_s16 = scalar_lea.hbm %s2148_s9, 1024 }
  0x4a   :  { %p1603_p4 = scmp.ne.s32.totalorder %s2148_s9, %s1602_s16  ;;  %p1606_p5 = scmp.lt.u32.totalorder %s1602_s16, %s2148_s9 }
  0x4c   :  { %p1608_p6 = pnand %p1606_p5, %p1603_p4 }
  0x4e   :  { %1611 = shalt.err (!%p1608_p6)
}
  0x4f   :  { %s1612_s21 = scalar_lea.vmem %s129_s22, 1024  ;;  %p1617_p8 = scmp.lt.s32.totalorder %s129_s22, %s129_s22 }
  0x50   :  { %p1613_p7 = scmp.ne.s32.totalorder %s129_s22, %s1612_s21  ;;  %p1618_p9 = scmp.lt.s32.totalorder %s1612_s21, %s1612_s21 }
  0x52   :  { %p1619_p10 = por %p1618_p9, %p1617_p8 }
  0x54   :  { %p1620_p11 = pnand %p1619_p10, %p1613_p7 }
  0x56   :  { %1623 = shalt.err (!%p1620_p11)
}
  0x57   :  { %134 = dma.hbm_to_vmem [thread:$0]  %s2148_s9, 1024, %s129_s22, [#allocation18], %s1797_s18, %s1797_s18, %s1798_s24  }
  0x58   :  { %s1801_s23 = smov [#allocation2]   ;;  %s1802_s25 = smov [#allocation7]  }
  0x59   :  { %s28_s1 = sshll.u32 %s1801_s23, 4  ;;  %s53_s26 = sshll.u32 %s1802_s25, 4  ;;  %s29_s1 = int_to_ptr.vmem [resolvable:$true] %s28_s1  ;;  %s54_s26 = int_to_ptr.vmem [resolvable:$true] %s53_s26 }
  0x5a   :  { %s1624_s29 = scalar_lea.hbm %s2139_s0, 128 }
  0x5b   :  { %p1625_p12 = scmp.ne.s32.totalorder %s2139_s0, %s1624_s29  ;;  %p1628_p13 = scmp.lt.u32.totalorder %s1624_s29, %s2139_s0 }
  0x5d   :  { %p1630_p0 = pnand %p1628_p13, %p1625_p12 }
  0x5f   :  { %1633 = shalt.err (!%p1630_p0)
}
  0x60   :  { %s1634_s9 = scalar_lea.vmem %s29_s1, 128  ;;  %p1639_p2 = scmp.lt.s32.totalorder %s29_s1, %s29_s1 }
  0x61   :  { %p1635_p1 = scmp.ne.s32.totalorder %s29_s1, %s1634_s9  ;;  %p1640_p3 = scmp.lt.s32.totalorder %s1634_s9, %s1634_s9 }
  0x63   :  { %p1641_p4 = por %p1640_p3, %p1639_p2 }
  0x65   :  { %p1642_p5 = pnand %p1641_p4, %p1635_p1 }
  0x67   :  { %1645 = shalt.err (!%p1642_p5)
}
  0x68   :  { %34 = dma.hbm_to_vmem [thread:$0]  %s2139_s0, 128, %s29_s1, [#allocation3], %s1797_s18, %s1797_s18, %s1798_s24  }
  0x69   :  { %s1646_s3 = scalar_lea.hbm %s2141_s2, 48 }
  0x6a   :  { %p1647_p6 = scmp.ne.s32.totalorder %s2141_s2, %s1646_s3  ;;  %p1650_p7 = scmp.lt.u32.totalorder %s1646_s3, %s2141_s2 }
  0x6c   :  { %p1652_p8 = pnand %p1650_p7, %p1647_p6 }
  0x6e   :  { %1655 = shalt.err (!%p1652_p8)
}
  0x6f   :  { %s1656_s20 = scalar_lea.vmem %s54_s26, 48  ;;  %s1660_s23 = scalar_lea.vmem %s54_s26, 64 }
  0x70   :  { %p1657_p9 = scmp.ne.s32.totalorder %s54_s26, %s1656_s20  ;;  %p1661_p10 = scmp.lt.s32.totalorder %s54_s26, %s54_s26 }
  0x71   :  { %p1662_p11 = scmp.lt.s32.totalorder %s1660_s23, %s1656_s20 }
  0x73   :  { %p1663_p12 = por %p1662_p11, %p1661_p10 }
  0x75   :  { %p1664_p13 = pnand %p1663_p12, %p1657_p9 }
  0x77   :  { %1667 = shalt.err (!%p1664_p13)
}
  0x78   :  { %56 = dma.hbm_to_vmem [thread:$0]  %s2141_s2, 48, %s54_s26, [#allocation6]  }
  0x79   :  { %s1803_s24 = smov [#allocation10]   ;;  %s1804_s25 = smov [#allocation13]  }
  0x7a   :  { %s75_s1 = sshll.u32 %s1803_s24, 4  ;;  %s97_s27 = sshll.u32 %s1804_s25, 4  ;;  %s76_s1 = int_to_ptr.vmem [resolvable:$true] %s75_s1  ;;  %s98_s27 = int_to_ptr.vmem [resolvable:$true] %s97_s27 }
  0x7b   :  { %s1668_s5 = scalar_lea.hbm %s2143_s4, 16 }
  0x7c   :  { %p1669_p0 = scmp.ne.s32.totalorder %s2143_s4, %s1668_s5  ;;  %p1672_p1 = scmp.lt.u32.totalorder %s1668_s5, %s2143_s4 }
  0x7e   :  { %p1674_p2 = pnand %p1672_p1, %p1669_p0 }
  0x80   :  { %1677 = shalt.err (!%p1674_p2)
}
  0x81   :  { %s1678_s2 = scalar_lea.vmem %s76_s1, 16  ;;  %s1682_s26 = scalar_lea.vmem %s76_s1, 32 }
  0x82   :  { %p1679_p3 = scmp.ne.s32.totalorder %s76_s1, %s1678_s2  ;;  %p1683_p4 = scmp.lt.s32.totalorder %s76_s1, %s76_s1 }
  0x83   :  { %p1684_p5 = scmp.lt.s32.totalorder %s1682_s26, %s1678_s2 }
  0x85   :  { %p1685_p6 = por %p1684_p5, %p1683_p4 }
  0x87   :  { %p1686_p7 = pnand %p1685_p6, %p1679_p3 }
  0x89   :  { %1689 = shalt.err (!%p1686_p7)
}
  0x8a   :  { %78 = dma.hbm_to_vmem [thread:$0]  %s2143_s4, 16, %s76_s1, [#allocation9]  }
  0x8b   :  { %s1690_s3 = scalar_lea.hbm %s2145_s6, 16 }
  0x8c   :  { %p1691_p8 = scmp.ne.s32.totalorder %s2145_s6, %s1690_s3  ;;  %p1694_p9 = scmp.lt.u32.totalorder %s1690_s3, %s2145_s6 }
  0x8e   :  { %p1696_p10 = pnand %p1694_p9, %p1691_p8 }
  0x90   :  { %1699 = shalt.err (!%p1696_p10)
}
  0x91   :  { %s1700_s20 = scalar_lea.vmem %s98_s27, 16  ;;  %s1704_s23 = scalar_lea.vmem %s98_s27, 32 }
  0x92   :  { %p1701_p11 = scmp.ne.s32.totalorder %s98_s27, %s1700_s20  ;;  %p1705_p12 = scmp.lt.s32.totalorder %s98_s27, %s98_s27 }
  0x93   :  { %p1706_p13 = scmp.lt.s32.totalorder %s1704_s23, %s1700_s20 }
  0x95   :  { %p1707_p0 = por %p1706_p13, %p1705_p12 }
  0x97   :  { %p1708_p1 = pnand %p1707_p0, %p1701_p11 }
  0x99   :  { %1711 = shalt.err (!%p1708_p1)
}
  0x9a   :  { %100 = dma.hbm_to_vmem [thread:$0]  %s2145_s6, 16, %s98_s27, [#allocation12]  }
  0x9b   :  { %s1805_s18 = smov [#allocation16]   ;;  %s1806_s1 = smov [#allocation19]  }
  0x9c   :  { %s119_s24 = sshll.u32 %s1805_s18, 4  ;;  %s141_s25 = sshll.u32 %s1806_s1, 4  ;;  %s120_s24 = int_to_ptr.vmem [resolvable:$true] %s119_s24  ;;  %s142_s25 = int_to_ptr.vmem [resolvable:$true] %s141_s25 }
  0x9d   :  { %s1712_s5 = scalar_lea.hbm %s2147_s8, 16 }
  0x9e   :  { %p1713_p2 = scmp.ne.s32.totalorder %s2147_s8, %s1712_s5  ;;  %p1716_p3 = scmp.lt.u32.totalorder %s1712_s5, %s2147_s8 }
  0xa0   :  { %p1718_p4 = pnand %p1716_p3, %p1713_p2 }
  0xa2   :  { %1721 = shalt.err (!%p1718_p4)
}
  0xa3   :  { %s1722_s6 = scalar_lea.vmem %s120_s24, 16  ;;  %s1726_s27 = scalar_lea.vmem %s120_s24, 32 }
  0xa4   :  { %p1723_p5 = scmp.ne.s32.totalorder %s120_s24, %s1722_s6  ;;  %p1727_p6 = scmp.lt.s32.totalorder %s120_s24, %s120_s24 }
  0xa5   :  { %p1728_p7 = scmp.lt.s32.totalorder %s1726_s27, %s1722_s6 }
  0xa7   :  { %p1729_p8 = por %p1728_p7, %p1727_p6 }
  0xa9   :  { %p1730_p9 = pnand %p1729_p8, %p1723_p5 }
  0xab   :  { %1733 = shalt.err (!%p1730_p9)
}
  0xac   :  { %122 = dma.hbm_to_vmem [thread:$0]  %s2147_s8, 16, %s120_s24, [#allocation15]  }
  0xad   :  { %s1734_s16 = scalar_lea.hbm %s2149_s10, 16 }
  0xae   :  { %p1735_p10 = scmp.ne.s32.totalorder %s2149_s10, %s1734_s16  ;;  %p1738_p11 = scmp.lt.u32.totalorder %s1734_s16, %s2149_s10 }
  0xb0   :  { %p1740_p12 = pnand %p1738_p11, %p1735_p10 }
  0xb2   :  { %1743 = shalt.err (!%p1740_p12)
}
  0xb3   :  { %s1744_s21 = scalar_lea.vmem %s142_s25, 16  ;;  %s1748_s7 = scalar_lea.vmem %s142_s25, 32 }
  0xb4   :  { %p1745_p13 = scmp.ne.s32.totalorder %s142_s25, %s1744_s21  ;;  %p1749_p0 = scmp.lt.s32.totalorder %s142_s25, %s142_s25 }
  0xb5   :  { %p1750_p1 = scmp.lt.s32.totalorder %s1748_s7, %s1744_s21 }
  0xb7   :  { %p1751_p2 = por %p1750_p1, %p1749_p0 }
  0xb9   :  { %p1752_p3 = pnand %p1751_p2, %p1745_p13 }
  0xbb   :  { %1755 = shalt.err (!%p1752_p3)
}
  0xbc   :  { %144 = dma.hbm_to_vmem [thread:$0]  %s2149_s10, 16, %s142_s25, [#allocation18]  }
  0xbd   :  { %1778 = dma.done.wait [#allocation3], 128  }
  0xbe   :  { %1779 = vsyncadd [#allocation3], 4294967168 }
  0xbf   :  { %1780 = dma.done.wait [#allocation6], 3120  }
  0xc0   :  { %1781 = vsyncadd [#allocation6], 4294964176 }
  0xc1   :  { %1782 = dma.done.wait [#allocation9], 1040  }
  0xc2   :  { %1783 = vsyncadd [#allocation9], 4294966256 }
  0xc3   :  { %1784 = dma.done.wait [#allocation12], 1040  }
  0xc4   :  { %1785 = vsyncadd [#allocation12], 4294966256 }
  0xc5   :  { %1786 = dma.done.wait [#allocation15], 1040  }
  0xc6   :  { %1787 = vsyncadd [#allocation15], 4294966256 }
  0xc7   :  { %1788 = dma.done.wait [#allocation18], 1040  }
  0xc8   :  { %1789 = vsyncadd [#allocation18], 4294966256  ;;  %v1807_v0 = vmov 0   ;;  %v1416_v1 = vld [vmem:[#allocation5 + $0x4] ss:$12 sps:$4 sm:$0xff]   ;;  %v2019_v17 = vld [vmem:[#allocation2] sm:$0xff]   ;;  %v230_v35 = vlaneseq }
  0xc9   :  { %411 = vmatprep.mubr.bf16.mxu0 %v1807_v0  ;;  %v1418_v2 = vld [vmem:[#allocation5] ss:$12 sps:$4 sm:$0xff]   ;;  %379 = vmatprep.subr.bf16.mxu0 %v1416_v1  ;;  %v1419_v3 = vld [vmem:[#allocation5 + $0x1c] ss:$12 sps:$4 sm:$0xff]   ;;  %v1421_v4 = vld [vmem:[#allocation5 + $0x18] ss:$12 sps:$4 sm:$0xff]  }
  0xca   :  { %380 = vmatpush1.bf16.msra.mxu0 %v1418_v2  ;;  %v1422_v5 = vld [vmem:[#allocation5 + $0x34] ss:$12 sps:$4 sm:$0xff]   ;;  %v1424_v6 = vld [vmem:[#allocation5 + $0x30] ss:$12 sps:$4 sm:$0xff]   ;;  %v1425_v7 = vld [vmem:[#allocation5 + $0x4c] ss:$12 sps:$4 sm:$0xff]  }
  0xcb   :  { %381 = vmatprep.subr.bf16.mxu0 %v1419_v3  ;;  %v1427_v8 = vld [vmem:[#allocation5 + $0x48] ss:$12 sps:$4 sm:$0xff]   ;;  %v1428_v9 = vld [vmem:[#allocation5 + $0x64] ss:$12 sps:$4 sm:$0xff]   ;;  %v1430_v10 = vld [vmem:[#allocation5 + $0x60] ss:$12 sps:$4 sm:$0xff]  }
  0xcc   :  { %v1431_v11 = vld [vmem:[#allocation5 + $0x7c] ss:$12 sps:$4 sm:$0xff]   ;;  %v1433_v12 = vld [vmem:[#allocation5 + $0x78] ss:$12 sps:$4 sm:$0xff]   ;;  %v1434_v13 = vld [vmem:[#allocation5 + $0x94] ss:$12 sps:$4 sm:$0xff]  }
  0xcd   :  { %v1436_v14 = vld [vmem:[#allocation5 + $0x90] ss:$12 sps:$4 sm:$0xff]   ;;  %v1437_v15 = vld [vmem:[#allocation5 + $0xac] ss:$12 sps:$4 sm:$0xff]   ;;  %v1439_v16 = vld [vmem:[#allocation5 + $0xa8] ss:$12 sps:$4 sm:$0xff]  }
  0xce   :  { %382 = vmatpush1.bf16.msra.mxu0 %v1421_v4  ;;  %v1441_v18 = vld [vmem:[#allocation8] sm:$0xff]   ;;  %v1808_v19 = vmov 0.0   ;;  %v1442_v20 = vld [vmem:[#allocation8 + $0x8] sm:$0xff]   ;;  %v1443_v21 = vld [vmem:[#allocation8 + $0x10] sm:$0xff]   ;;  %vm1809_vm0 = vmmov 0   ;;  %v2048_v36 = vshrl.u32 %v230_v35, 7 }
  0xcf   :  { %383 = vmatprep.subr.bf16.mxu0 %v1422_v5  ;;  %1283 = vmatprep.subr.bf16.mxu1 %v1808_v19  ;;  %v1444_v22 = vld [vmem:[#allocation8 + $0x18] sm:$0xff]   ;;  %v1445_v23 = vld [vmem:[#allocation8 + $0x20] sm:$0xff]   ;;  %v1446_v24 = vld [vmem:[#allocation8 + $0x28] sm:$0xff]   ;;  %vm1077_vm1 = vcmask 7168   ;;  %s1810_s10 = smov 32   ;;  %s1811_s18 = smov [#allocation20]  }
  0xd0   :  { %v1447_v25 = vld [vmem:[#allocation8 + $0x30] sm:$0xff]   ;;  %v1448_v26 = vld [vmem:[#allocation8 + $0x38] sm:$0xff]   ;;  %1299 = vmatprep.mubr.msk.bf16.mxu1 %vm1809_vm0, %v1808_v19  ;;  %v232_v37 = vsub.s32 0, %v2048_v36  ;;  %v236_v39 = vsub.s32 1, %v2048_v36  ;;  %s1163_s24 = sshll.u32 %s1811_s18, 4  ;;  %s1164_s24 = int_to_ptr.vmem [resolvable:$true] %s1163_s24 }
  0xd1   :  { %v1449_v27 = vld [vmem:[#allocation5 + $0x8] ss:$12 sps:$4 sm:$0xff]   ;;  %v1451_v28 = vld [vmem:[#allocation5 + $0x20] ss:$12 sps:$4 sm:$0xff]   ;;  %v1453_v29 = vld [vmem:[#allocation5 + $0x38] ss:$12 sps:$4 sm:$0xff]   ;;  %p1761_p5 = scmp.lt.s32.totalorder %s1164_s24, %s1164_s24 }
  0xd2   :  { %384 = vmatpush1.bf16.msra.mxu0 %v1424_v6  ;;  %1284 = vmatpush3.bf16.msra.mxu1 %v1449_v27  ;;  %v1455_v30 = vld [vmem:[#allocation5 + $0x50] ss:$12 sps:$4 sm:$0xff]   ;;  %v1457_v31 = vld [vmem:[#allocation5 + $0x68] ss:$12 sps:$4 sm:$0xff]   ;;  %v1459_v32 = vld [vmem:[#allocation5 + $0x80] ss:$12 sps:$4 sm:$0xff]  }
  0xd3   :  { %385 = vmatprep.subr.bf16.mxu0 %v1425_v7  ;;  %1285 = vmatprep.subr.bf16.mxu1 %v1808_v19  ;;  %v1461_v33 = vld [vmem:[#allocation5 + $0x98] ss:$12 sps:$4 sm:$0xff]   ;;  %v1463_v34 = vld [vmem:[#allocation5 + $0xb0] ss:$12 sps:$4 sm:$0xff]   ;;  %v2051_v38 = vld [vmem:[#allocation7] sm:$0x7] }
  0xd4   :  { %v233_v40 = vrot.slane %v2051_v38, %v232_v37  ;;  %v237_v41 = vrot.slane %v2051_v38, %v236_v39  ;;  %v1464_v37 = vld [vmem:[#allocation14 + $0x38] sm:$0xff]   ;;  %s1756_s25 = scalar_lea.vmem %s1164_s24, 128 }
  0xd5   :  { %v1465_v39 = vld [vmem:[#allocation11] sm:$0xff]   ;;  %p1757_p4 = scmp.ne.s32.totalorder %s1164_s24, %s1756_s25  ;;  %p1762_p6 = scmp.lt.s32.totalorder %s1756_s25, %s1756_s25 }
  0xd6   :  { %386 = vmatpush1.bf16.msra.mxu0 %v1427_v8  ;;  %1286 = vmatpush3.bf16.msra.mxu1 %v1451_v28 }
  0xd7   :  { %387 = vmatprep.subr.bf16.mxu0 %v1428_v9  ;;  %1287 = vmatprep.subr.bf16.mxu1 %v1808_v19  ;;  %p1763_p7 = por %p1762_p6, %p1761_p5 }
  0xd9   :  { %p1764_p8 = pnand %p1763_p7, %p1757_p4 }
  0xda   :  { %388 = vmatpush1.bf16.msra.mxu0 %v1430_v10  ;;  %1288 = vmatpush3.bf16.msra.mxu1 %v1453_v29  ;;  %v1452_v29 = vld [vmem:[#allocation14 + $0x8] sm:$0xff]  }
  0xdb   :  { %389 = vmatprep.subr.bf16.mxu0 %v1431_v11  ;;  %1289 = vmatprep.subr.bf16.mxu1 %v1808_v19 }
  0xde   :  { %390 = vmatpush1.bf16.msra.mxu0 %v1433_v12  ;;  %1290 = vmatpush3.bf16.msra.mxu1 %v1455_v30  ;;  %v1454_v30 = vld [vmem:[#allocation14 + $0x10] sm:$0xff]  }
  0xdf   :  { %391 = vmatprep.subr.bf16.mxu0 %v1434_v13  ;;  %1291 = vmatprep.subr.bf16.mxu1 %v1808_v19 }
  0xe2   :  { %392 = vmatpush1.bf16.msra.mxu0 %v1436_v14  ;;  %1292 = vmatpush3.bf16.msra.mxu1 %v1457_v31  ;;  %v1456_v31 = vld [vmem:[#allocation14 + $0x18] sm:$0xff]  }
  0xe3   :  { %393 = vmatprep.subr.bf16.mxu0 %v1437_v15  ;;  %1293 = vmatprep.subr.bf16.mxu1 %v1808_v19 }
  0xe6   :  { %394 = vmatpush1.bf16.msra.mxu0 %v1439_v16  ;;  %1294 = vmatpush3.bf16.msra.mxu1 %v1459_v32  ;;  %v1458_v32 = vld [vmem:[#allocation14 + $0x20] sm:$0xff]  }
  0xe7   :  { %1303 = vmatprep.subr.bf16.mxu0 %v1808_v19  ;;  %1295 = vmatprep.subr.bf16.mxu1 %v1808_v19 }
  0xe9   :  { %412 = vmatmul.mubr.bf16.vlgmr.msra.gmra.mrb[0].mxu0 %v2019_v17 }
  0xea   :  { %1304 = vmatpush3.bf16.msra.mxu0 %v1441_v18  ;;  %1319 = vmatprep.mubr.msk.bf16.mxu0 %vm1809_vm0, %v1808_v19 }
  0xeb   :  { %1305 = vmatprep.subr.bf16.mxu0 %v1808_v19  ;;  %1296 = vmatpush3.bf16.msra.mxu1 %v1461_v33  ;;  %v1460_v33 = vld [vmem:[#allocation14 + $0x28] sm:$0xff]  }
  0xec   :  { %1297 = vmatprep.subr.bf16.mxu1 %v1808_v19 }
  0xee   :  { %1306 = vmatpush3.bf16.msra.mxu0 %v1442_v20 }
  0xef   :  { %1307 = vmatprep.subr.bf16.mxu0 %v1808_v19  ;;  %1298 = vmatpush3.bf16.msra.mxu1 %v1463_v34  ;;  %v1462_v34 = vld [vmem:[#allocation14 + $0x30] sm:$0xff]  }
  0xf0   :  { %1323 = vmatprep.subr.bf16.mxu1 %v1808_v19 }
  0xf2   :  { %1308 = vmatpush3.bf16.msra.mxu0 %v1443_v21  ;;  %1300 = vmatmul.mubr.bf16.vlgmr.msra.gmra.mrb[0].mxu1 %v2019_v17 }
  0xf3   :  { %1309 = vmatprep.subr.bf16.mxu0 %v1808_v19  ;;  %1339 = vmatprep.mubr.msk.bf16.mxu1 %vm1809_vm0, %v1808_v19 }
  0xf4   :  { %1324 = vmatpush3.bf16.msra.mxu1 %v1465_v39  ;;  %v1473_v39 = vld [vmem:[#allocation17] sm:$0xff]  }
  0xf5   :  { %1325 = vmatprep.subr.bf16.mxu1 %v1808_v19 }
  0xf6   :  { %1310 = vmatpush3.bf16.msra.mxu0 %v1444_v22 }
  0xf7   :  { %1311 = vmatprep.subr.bf16.mxu0 %v1808_v19 }
  0xfa   :  { %1312 = vmatpush3.bf16.msra.mxu0 %v1445_v23 }
  0xfb   :  { %1313 = vmatprep.subr.bf16.mxu0 %v1808_v19 }
  0xfe   :  { %1314 = vmatpush3.bf16.msra.mxu0 %v1446_v24  ;;  %v1450_v24 = vld [vmem:[#allocation14] sm:$0xff]  }
  0xff   :  { %1315 = vmatprep.subr.bf16.mxu0 %v1808_v19 }
 0x102   :  { %1316 = vmatpush3.bf16.msra.mxu0 %v1447_v25 }
 0x103   :  { %1317 = vmatprep.subr.bf16.mxu0 %v1808_v19 }
 0x106   :  { %1318 = vmatpush3.bf16.msra.mxu0 %v1448_v26 }
 0x107   :  { %1343 = vmatprep.subr.bf16.mxu0 %v1808_v19 }
 0x1bc   :  { %v413_v42 = vpop.f32.mrb[0].mxu0 }
 0x1bd   :  { %v414_v43 = vadd.f32 %v413_v42, %v233_v40  ;;  %v415_v44 = vpop.f32.mrb[1].mxu0  ;;  %v1468_v42 = vld [vmem:[#allocation11 + $0x18] sm:$0xff]  }
 0x1be   :  { %v416_v45 = vadd.f32 %v415_v44, %v237_v41  ;;  %v417_v46 = vpop.f32.mrb[2].mxu0  ;;  %v1470_v44 = vld [vmem:[#allocation11 + $0x28] sm:$0xff]  }
 0x1bf   :  { %v463_v47 = vmul.f32 %v414_v43, %v414_v43  ;;  %v418_v48 = vadd.f32 %v417_v46, %v233_v40  ;;  %v419_v49 = vpop.f32.mrb[3].mxu0  ;;  %v1466_v40 = vld [vmem:[#allocation11 + $0x8] sm:$0xff]   ;;  %v1472_v46 = vld [vmem:[#allocation11 + $0x38] sm:$0xff]  }
 0x1c0   :  { %v464_v50 = vmul.f32 %v416_v45, %v416_v45  ;;  %v420_v51 = vadd.f32 %v419_v49, %v237_v41  ;;  %1326 = vmatpush3.bf16.msra.mxu1 %v1466_v40  ;;  %v1467_v41 = vld [vmem:[#allocation11 + $0x10] sm:$0xff]  }
 0x1c1   :  { %v469_v52 = vmul.f32 %v463_v47, %v414_v43  ;;  %v466_v53 = vmul.f32 %v418_v48, %v418_v48  ;;  %1327 = vmatprep.subr.bf16.mxu1 %v1808_v19  ;;  %v240_v47 = vsub.s32 2, %v2048_v36 }
 0x1c2   :  { %v470_v54 = vmul.f32 %v464_v50, %v416_v45  ;;  %v467_v55 = vmul.f32 %v420_v51, %v420_v51 }
 0x1c3   :  { %v475_v56 = vmul.f32 0.044715, %v469_v52  ;;  %v472_v57 = vmul.f32 %v466_v53, %v418_v48 }
 0x1c4   :  { %v476_v58 = vmul.f32 0.044715, %v470_v54  ;;  %v473_v59 = vmul.f32 %v467_v55, %v420_v51  ;;  %1328 = vmatpush3.bf16.msra.mxu1 %v1467_v41 }
 0x1c5   :  { %v481_v60 = vadd.f32 %v475_v56, %v414_v43  ;;  %v478_v61 = vmul.f32 0.044715, %v472_v57  ;;  %1329 = vmatprep.subr.bf16.mxu1 %v1808_v19  ;;  %v456_v49 = vpop.f32.mrb[0].mxu1 }
 0x1c6   :  { %v479_v62 = vmul.f32 0.044715, %v473_v59  ;;  %v482_v63 = vadd.f32 %v476_v58, %v416_v45  ;;  %v1301_v50 = vpop.f32.mrb[1].mxu1 }
 0x1c7   :  { %v487_v0 = vmul.f32 0.7978846, %v481_v60  ;;  %v484_v1 = vadd.f32 %v478_v61, %v418_v48  ;;  %v459_v52 = vpop.f32.mrb[2].mxu1 }
 0x1c8   :  { %v485_v2 = vadd.f32 %v479_v62, %v420_v51  ;;  %v488_v3 = vmul.f32 0.7978846, %v482_v63  ;;  %1330 = vmatpush3.bf16.msra.mxu1 %v1468_v42  ;;  %v1302_v54 = vpop.f32.mrb[3].mxu1 }
 0x1c9   :  { %1482 = vtanh.f32 %v487_v0  ;;  %v490_v4 = vmul.f32 0.7978846, %v484_v1  ;;  %1331 = vmatprep.subr.bf16.mxu1 %v1808_v19 }
 0x1ca   :  { %v491_v5 = vmul.f32 0.7978846, %v485_v2  ;;  %1484 = vtanh.f32 %v488_v3 }
 0x1cb   :  { %1486 = vtanh.f32 %v490_v4 }
 0x1cc   :  { %1488 = vtanh.f32 %v491_v5 }
 0x1d3   :  { %v1483_v6 = vpop.eup %1482 }
 0x1d4   :  { %v1485_v7 = vpop.eup %1484  ;;  %v499_v8 = vadd.f32 1.0, %v1483_v6 }
 0x1d5   :  { %v1487_v9 = vpop.eup %1486  ;;  %v500_v10 = vadd.f32 1.0, %v1485_v7 }
 0x1d6   :  { %v1489_v11 = vpop.eup %1488  ;;  %v505_v12 = vmul.f32 0.5, %v499_v8  ;;  %v502_v13 = vadd.f32 1.0, %v1487_v9  ;;  %v1202_v8 = vld [vmem:[#allocation10] ss:$0 sm:$0xff] }
 0x1d7   :  { %v506_v14 = vmul.f32 0.5, %v500_v10  ;;  %v503_v15 = vadd.f32 1.0, %v1489_v11 }
 0x1d8   :  { %v508_v16 = vmul.f32 0.5, %v502_v13  ;;  %v511_v21 = vmul.f32 %v505_v12, %v414_v43  ;;  %v1469_v43 = vld [vmem:[#allocation11 + $0x20] sm:$0xff]  }
 0x1d9   :  { %v512_v18 = vmul.f32 %v506_v14, %v416_v45  ;;  %v509_v20 = vmul.f32 0.5, %v503_v15  ;;  %1332 = vmatpush3.bf16.msra.mxu1 %v1469_v43  ;;  %v1471_v45 = vld [vmem:[#allocation11 + $0x30] sm:$0xff]  }
 0x1da   :  { %v514_v22 = vmul.f32 %v508_v16, %v418_v48  ;;  %1333 = vmatprep.subr.bf16.mxu1 %v1808_v19  ;;  %v241_v48 = vrot.slane %v2051_v38, %v240_v47 }
 0x1db   :  { %v867_v23 = vmul.f32 %v512_v18, %v512_v18  ;;  %v515_v25 = vmul.f32 %v509_v20, %v420_v51 }
 0x1dc   :  { %v517_v26 = vpack.c.bf16 %v514_v22, %v511_v21  ;;  %v457_v51 = vadd.f32 %v456_v49, %v241_v48  ;;  %v460_v53 = vadd.f32 %v459_v52, %v241_v48  ;;  %v1474_v49 = vld [vmem:[#allocation17 + $0x8] sm:$0xff]  }
 0x1dd   :  { %869 = vadd.xlane.f32.xlu0 %v867_v23  ;;  %v761_v27 = vpack.c.bf16 %v515_v25, %v512_v18  ;;  %v868_v28 = vmul.f32 %v515_v25, %v515_v25  ;;  %1334 = vmatpush3.bf16.msra.mxu1 %v1470_v44 }
 0x1de   :  { %1320 = vmatmul.mubr.bf16.vlgmr.msra.gmra.mrb[4].mxu0 %v517_v26  ;;  %1335 = vmatprep.subr.bf16.mxu1 %v1808_v19  ;;  %v465_v55 = vmul.f32 %v457_v51, %v457_v51  ;;  %v468_v56 = vmul.f32 %v460_v53, %v460_v53 }
 0x1df   :  { %1344 = vmatpush3.bf16.msra.mxu0 %v1450_v24  ;;  %1359 = vmatprep.mubr.msk.bf16.mxu0 %vm1809_vm0, %v1808_v19 }
 0x1e0   :  { %1345 = vmatprep.subr.bf16.mxu0 %v1808_v19  ;;  %v471_v57 = vmul.f32 %v465_v55, %v457_v51  ;;  %v474_v58 = vmul.f32 %v468_v56, %v460_v53  ;;  %v1476_v56 = vld [vmem:[#allocation17 + $0x18] sm:$0xff]  }
 0x1e1   :  { %871 = vadd.xlane.f32.xlu0 %v868_v28  ;;  %1336 = vmatpush3.bf16.msra.mxu1 %v1471_v45  ;;  %v1228_v45 = vld [vmem:[#allocation16] ss:$0 sm:$0xff] }
 0x1e2   :  { %1337 = vmatprep.subr.bf16.mxu1 %v1808_v19  ;;  %v477_v59 = vmul.f32 0.044715, %v471_v57  ;;  %v480_v60 = vmul.f32 0.044715, %v474_v58  ;;  %v1477_v57 = vld [vmem:[#allocation17 + $0x20] sm:$0xff]   ;;  %v1478_v58 = vld [vmem:[#allocation17 + $0x28] sm:$0xff]  }
 0x1e3   :  { %1346 = vmatpush3.bf16.msra.mxu0 %v1452_v29 }
 0x1e4   :  { %1347 = vmatprep.subr.bf16.mxu0 %v1808_v19  ;;  %v483_v61 = vadd.f32 %v477_v59, %v457_v51  ;;  %v486_v62 = vadd.f32 %v480_v60, %v460_v53  ;;  %v1479_v59 = vld [vmem:[#allocation17 + $0x30] sm:$0xff]   ;;  %v1480_v60 = vld [vmem:[#allocation17 + $0x38] sm:$0xff]  }
 0x1e5   :  { %1338 = vmatpush3.bf16.msra.mxu1 %v1472_v46 }
 0x1e6   :  { %1363 = vmatprep.subr.bf16.mxu1 %v1808_v19  ;;  %v489_v36 = vmul.f32 0.7978846, %v483_v61  ;;  %v492_v63 = vmul.f32 0.7978846, %v486_v62  ;;  %v1211_v61 = vld [vmem:[#allocation13] ss:$0 sm:$0xff] }
 0x1e7   :  { %1348 = vmatpush3.bf16.msra.mxu0 %v1454_v30 }
 0x1e8   :  { %1349 = vmatprep.subr.bf16.mxu0 %v1808_v19  ;;  %1490 = vtanh.f32 %v489_v36 }
 0x1e9   :  { %1492 = vtanh.f32 %v492_v63 }
 0x1eb   :  { %1350 = vmatpush3.bf16.msra.mxu0 %v1456_v31 }
 0x1ec   :  { %1351 = vmatprep.subr.bf16.mxu0 %v1808_v19 }
 0x1ef   :  { %1352 = vmatpush3.bf16.msra.mxu0 %v1458_v32 }
 0x1f0   :  { %1353 = vmatprep.subr.bf16.mxu0 %v1808_v19 }
 0x1f2   :  { %v1491_v38 = vpop.eup %1490 }
 0x1f3   :  { %1354 = vmatpush3.bf16.msra.mxu0 %v1460_v33  ;;  %v1493_v0 = vpop.eup %1492  ;;  %v501_v1 = vadd.f32 1.0, %v1491_v38 }
 0x1f4   :  { %1355 = vmatprep.subr.bf16.mxu0 %v1808_v19  ;;  %v504_v2 = vadd.f32 1.0, %v1493_v0 }
 0x1f5   :  { %v507_v3 = vmul.f32 0.5, %v501_v1 }
 0x1f6   :  { %v510_v4 = vmul.f32 0.5, %v504_v2 }
 0x1f7   :  { %1356 = vmatpush3.bf16.msra.mxu0 %v1462_v34  ;;  %v2075_v5 = vmul.f32 %v507_v3, %v457_v51 }
 0x1f8   :  { %1357 = vmatprep.subr.bf16.mxu0 %v1808_v19  ;;  %v2077_v6 = vmul.f32 %v510_v4, %v460_v53  ;;  %v1475_v53 = vld [vmem:[#allocation17 + $0x10] sm:$0xff]  }
 0x1fa   :  { %v926_v7 = vpack.c.bf16 %v2077_v6, %v2075_v5 }
 0x1fb   :  { %1358 = vmatpush3.bf16.msra.mxu0 %v1464_v37 }
 0x1fe   :  { %1360 = vmatmul.mubr.bf16.vlgmr.msra.gmra.mrb[8].mxu0 %v761_v27 }
 0x26a   :  { %v870_v33 = vpop.xlane.xlu0 %869 }
 0x26e   :  { %v872_v50 = vpop.xlane.xlu0 %871 }
 0x2b1   :  { %v623_v9 = vpop.f32.mrb[4].mxu0 }
 0x2b2   :  { %v624_v10 = vadd.f32 %v1202_v8, %v623_v9  ;;  %v1321_v11 = vpop.f32.mrb[5].mxu0 }
 0x2b3   :  { %v626_v12 = vpop.f32.mrb[6].mxu0 }
 0x2b4   :  { %v630_v13 = vmul.f32 %v624_v10, %v624_v10  ;;  %v627_v14 = vadd.f32 %v1202_v8, %v626_v12  ;;  %v1322_v15 = vpop.f32.mrb[7].mxu0 }
 0x2b6   :  { %v632_v16 = vmul.f32 %v630_v13, %v624_v10  ;;  %v631_v18 = vmul.f32 %v627_v14, %v627_v14 }
 0x2b8   :  { %v634_v20 = vmul.f32 0.044715, %v632_v16  ;;  %v633_v21 = vmul.f32 %v631_v18, %v627_v14 }
 0x2ba   :  { %v636_v22 = vadd.f32 %v634_v20, %v624_v10  ;;  %v635_v23 = vmul.f32 0.044715, %v633_v21 }
 0x2bc   :  { %v638_v24 = vmul.f32 0.7978846, %v636_v22  ;;  %v637_v25 = vadd.f32 %v635_v23, %v627_v14 }
 0x2be   :  { %1494 = vtanh.f32 %v638_v24  ;;  %v639_v26 = vmul.f32 0.7978846, %v637_v25 }
 0x2c0   :  { %1496 = vtanh.f32 %v639_v26 }
 0x2c8   :  { %v1495_v27 = vpop.eup %1494 }
 0x2c9   :  { %v642_v28 = vadd.f32 1.0, %v1495_v27 }
 0x2ca   :  { %v1497_v29 = vpop.eup %1496 }
 0x2cb   :  { %v644_v30 = vmul.f32 0.5, %v642_v28  ;;  %v643_v31 = vadd.f32 1.0, %v1497_v29 }
 0x2cd   :  { %v645_v32 = vmul.f32 0.5, %v643_v31  ;;  %v2081_v34 = vmul.f32 %v644_v30, %v624_v10 }
 0x2cf   :  { %v2083_v37 = vmul.f32 %v645_v32, %v627_v14  ;;  %v1039_v55 = vmul.f32 %v2081_v34, %v2081_v34 }
 0x2d1   :  { %v860_v40 = vpop.f32.mrb[8].mxu0  ;;  %v648_v41 = vpack.c.bf16 %v2083_v37, %v2081_v34  ;;  %v1040_v2 = vmul.f32 %v2083_v37, %v2083_v37 }
 0x2d2   :  { %v873_v42 = vmul.f32 2.0, %v860_v40  ;;  %v1361_v43 = vpop.f32.mrb[9].mxu0 }
 0x2d3   :  { %v863_v44 = vpop.f32.mrb[10].mxu0  ;;  %1340 = vmatmul.mubr.bf16.vlgmr.msra.gmra.mrb[4].mxu1 %v648_v41 }
 0x2d4   :  { %v875_v46 = vsub.f32 %v870_v33, %v873_v42  ;;  %v874_v47 = vmul.f32 2.0, %v863_v44  ;;  %v1362_v48 = vpop.f32.mrb[11].mxu0  ;;  %1364 = vmatpush3.bf16.msra.mxu1 %v1473_v39  ;;  %1379 = vmatprep.mubr.msk.bf16.mxu1 %vm1809_vm0, %v1808_v19 }
 0x2d5   :  { %1365 = vmatprep.subr.bf16.mxu1 %v1808_v19 }
 0x2d6   :  { %v876_v51 = vsub.f32 %v872_v50, %v874_v47  ;;  %v2090_v52 = vadd.f32 %v1228_v45, %v875_v46 }
 0x2d8   :  { %1366 = vmatpush3.bf16.msra.mxu1 %v1474_v49  ;;  %886 = vmin.xlane.f32.xlu0 %v2090_v52  ;;  %v2093_v54 = vadd.f32 %v1228_v45, %v876_v51 }
 0x2d9   :  { %1367 = vmatprep.subr.bf16.mxu1 %v1808_v19 }
 0x2dc   :  { %1368 = vmatpush3.bf16.msra.mxu1 %v1475_v53  ;;  %1041 = vadd.xlane.f32.xlu0 %v1039_v55 }
 0x2dd   :  { %1369 = vmatprep.subr.bf16.mxu1 %v1808_v19 }
 0x2e0   :  { %1370 = vmatpush3.bf16.msra.mxu1 %v1476_v56 }
 0x2e1   :  { %1371 = vmatprep.subr.bf16.mxu1 %v1808_v19 }
 0x2e4   :  { %1372 = vmatpush3.bf16.msra.mxu1 %v1477_v57 }
 0x2e5   :  { %1373 = vmatprep.subr.bf16.mxu1 %v1808_v19 }
 0x2e8   :  { %1374 = vmatpush3.bf16.msra.mxu1 %v1478_v58  ;;  %v181_v58 = vunpack.c.l.bf16 %v2019_v17 }
 0x2e9   :  { %1375 = vmatprep.subr.bf16.mxu1 %v1808_v19 }
 0x2ec   :  { %1376 = vmatpush3.bf16.msra.mxu1 %v1479_v59 }
 0x2ed   :  { %1377 = vmatprep.subr.bf16.mxu1 %v1808_v19  ;;  %v1229_v19 = vld [vmem:[#allocation19] ss:$0 sm:$0xff] }
 0x2f0   :  { %1378 = vmatpush3.bf16.msra.mxu1 %v1480_v60 }
 0x2f3   :  { %1380 = vmatmul.mubr.bf16.vlgmr.msra.gmra.mrb[8].mxu1 %v926_v7 }
 0x365   :  { %v887_v14 = vpop.xlane.xlu0 %886 }
 0x366   :  { %v890_v18 = vmax.f32 %v887_v14, 0.0  ;;  %vm912_vm2 = vcmp.eq.f32.partialorder %v2090_v52, %v887_v14 }
 0x368   :  { %v1114_v23 = vsel %vm1077_vm1, %v890_v18, 0.0 }
 0x369   :  { %v1042_v30 = vpop.xlane.xlu0 %1041 }
 0x36a   :  { %v1045_v32 = vadd.f32 1e-12, %v1042_v30 }
 0x3a6   :  { %v754_v62 = vpop.f32.mrb[4].mxu1 }
 0x3a7   :  { %v755_v36 = vadd.f32 %v1211_v61, %v754_v62  ;;  %v1341_v63 = vpop.f32.mrb[5].mxu1 }
 0x3a8   :  { %v757_v38 = vpop.f32.mrb[6].mxu1 }
 0x3a9   :  { %892 = vmax.xlane.f32.xlu1 %v755_v36  ;;  %v1342_v0 = vpop.f32.mrb[7].mxu1  ;;  %v758_v1 = vadd.f32 %v1211_v61, %v757_v38  ;;  %v914_v28 = vsel %vm912_vm2, %v755_v36, -inf }
 0x3ad   :  { %894 = vmax.xlane.f32.xlu1 %v758_v1 }
 0x3b1   :  { %888 = vmin.xlane.f32.xlu1 %v2093_v54 }
 0x3b5   :  { %1043 = vadd.xlane.f32.xlu1 %v1040_v2 }
 0x3c6   :  { %v1032_v3 = vpop.f32.mrb[8].mxu1 }
 0x3c7   :  { %v1033_v4 = vadd.f32 %v1229_v19, %v1032_v3  ;;  %v1381_v5 = vpop.f32.mrb[9].mxu1 }
 0x3c8   :  { %v1035_v6 = vpop.f32.mrb[10].mxu1 }
 0x3c9   :  { %v1036_v7 = vadd.f32 %v1229_v19, %v1035_v6  ;;  %v1051_v8 = vmul.f32 %v1033_v4, %v1033_v4  ;;  %v1382_v9 = vpop.f32.mrb[11].mxu1 }
 0x3cb   :  { %1053 = vadd.xlane.f32.xlu0 %v1051_v8  ;;  %v1052_v10 = vmul.f32 %v1036_v7, %v1036_v7 }
 0x3cd   :  { %1055 = vadd.xlane.f32.xlu1 %v1052_v10 }
 0x436   :  { %v893_v11 = vpop.xlane.xlu1 %892 }
 0x437   :  { %v896_v12 = vsub.f32 %v755_v36, %v893_v11 }
 0x439   :  { %v898_v13 = vmul.f32 1.442695, %v896_v12 }
 0x43a   :  { %v895_v15 = vpop.xlane.xlu1 %894 }
 0x43b   :  { %1498 = vpow2.f32 %v898_v13  ;;  %v897_v16 = vsub.f32 %v758_v1, %v895_v15 }
 0x43d   :  { %v900_v20 = vmul.f32 1.442695, %v897_v16 }
 0x43e   :  { %v889_v21 = vpop.xlane.xlu1 %888 }
 0x43f   :  { %1500 = vpow2.f32 %v900_v20  ;;  %v891_v22 = vmax.f32 %v889_v21, 0.0  ;;  %vm913_vm3 = vcmp.eq.f32.partialorder %v2093_v54, %v889_v21 }
 0x440   :  { %v915_v29 = vsel %vm913_vm3, %v758_v1, -inf  ;;  %1502 = vrsqrt.f32 %v1045_v32 }
 0x441   :  { %v1115_v24 = vsel %vm1077_vm1, %v891_v22, 0.0 }
 0x442   :  { %v2111_v25 = vadd.f32 %v1115_v24, %v1114_v23  ;;  %v1044_v31 = vpop.xlane.xlu1 %1043 }
 0x443   :  { %v1046_v33 = vadd.f32 1e-12, %v1044_v31 }
 0x445   :  { %v1499_v26 = vpop.eup %1498  ;;  %1504 = vrsqrt.f32 %v1046_v33 }
 0x446   :  { %902 = vadd.xlane.f32.xlu0 %v1499_v26 }
 0x449   :  { %v1501_v27 = vpop.eup %1500 }
 0x44a   :  { %916 = vmax.xlane.f32.xlu0 %v914_v28  ;;  %904 = vadd.xlane.f32.xlu1 %v1501_v27  ;;  %v1503_v43 = vpop.eup %1502 }
 0x44b   :  { %v1049_v46 = vmul.f32 %v1503_v43, %v2081_v34 }
 0x44e   :  { %918 = vmax.xlane.f32.xlu1 %v915_v29 }
 0x44f   :  { %v1505_v44 = vpop.eup %1504 }
 0x450   :  { %v1050_v50 = vmul.f32 %v1505_v44, %v2083_v37  ;;  %v182_v37 = vunpack.c.h.bf16 %v2019_v17 }
 0x452   :  { %v1411_v1 = vpack.i.bf16 %v182_v37, %v181_v58 }
 0x458   :  { %v1054_v39 = vpop.xlane.xlu0 %1053 }
 0x459   :  { %v1057_v40 = vadd.f32 1e-12, %v1054_v39 }
 0x45a   :  { %v1056_v41 = vpop.xlane.xlu1 %1055 }
 0x45b   :  { %1506 = vrsqrt.f32 %v1057_v40  ;;  %v1058_v42 = vadd.f32 1e-12, %v1056_v41 }
 0x45d   :  { %1508 = vrsqrt.f32 %v1058_v42 }
 0x465   :  { %v1507_v45 = vpop.eup %1506 }
 0x466   :  { %v1061_v47 = vmul.f32 %v1507_v45, %v1033_v4 }
 0x467   :  { %v1509_v48 = vpop.eup %1508 }
 0x468   :  { %v1063_v49 = vmul.f32 %v1061_v47, %v1049_v46  ;;  %v1062_v51 = vmul.f32 %v1509_v48, %v1036_v7 }
 0x46a   :  { %1065 = vadd.xlane.f32.xlu0 %v1063_v49  ;;  %v1064_v52 = vmul.f32 %v1062_v51, %v1050_v50 }
 0x46c   :  { %1067 = vadd.xlane.f32.xlu1 %v1064_v52 }
 0x4d3   :  { %v903_v53 = vpop.xlane.xlu0 %902 }
 0x4d4   :  { %1510 = vlog2.f32 %v903_v53  ;;  %v1143_v53 = vand.u32 127, %v230_v35 }
 0x4d6   :  { %vm1144_vm4 = vcmp.eq.s32.totalorder %v1143_v53, 0  ;;  %vm1147_vm5 = vcmp.eq.s32.totalorder %v1143_v53, 1  ;;  %vm1150_vm6 = vcmp.eq.s32.totalorder %v1143_v53, 2  ;;  %vm1153_vm7 = vcmp.eq.s32.totalorder %v1143_v53, 3 }
 0x4d7   :  { %v905_v54 = vpop.xlane.xlu1 %904  ;;  %v917_v34 = vpop.xlane.xlu0 %916 }
 0x4d8   :  { %1512 = vlog2.f32 %v905_v54 }
 0x4db   :  { %v919_v63 = vpop.xlane.xlu1 %918 }
 0x4de   :  { %v1511_v55 = vpop.eup %1510 }
 0x4df   :  { %v907_v56 = vmul.f32 0.6931472, %v1511_v55 }
 0x4e1   :  { %v910_v57 = vadd.f32 %v907_v56, %v893_v11 }
 0x4e2   :  { %v1513_v59 = vpop.eup %1512 }
 0x4e3   :  { %v920_v60 = vsub.f32 %v910_v57, %v917_v34  ;;  %v909_v61 = vmul.f32 0.6931472, %v1513_v59 }
 0x4e5   :  { %v922_v62 = vmul.f32 %v920_v60, %v181_v58  ;;  %v911_v36 = vadd.f32 %v909_v61, %v895_v15 }
 0x4e7   :  { %v921_v38 = vsub.f32 %v911_v36, %v919_v63  ;;  %1071 = vrot.lane.b32.xlu0 %v922_v62, %s1810_s10 }
 0x4e9   :  { %v923_v0 = vmul.f32 %v921_v38, %v182_v37 }
 0x4eb   :  { %1073 = vrot.lane.b32.xlu1 %v923_v0, %s1810_s10 }
 0x4ef   :  { %1412 = vrot.lane.b32.xlu1 %v1411_v1, %s1810_s10 }
 0x4f7   :  { %v1066_v2 = vpop.xlane.xlu0 %1065 }
 0x4f8   :  { %v1126_v14 = vsub.f32 1.0, %v1066_v2 }
 0x4f9   :  { %v1068_v19 = vpop.xlane.xlu1 %1067 }
 0x4fa   :  { %v1127_v13 = vsub.f32 1.0, %v1068_v19  ;;  %v1130_v16 = vsel %vm1077_vm1, %v1126_v14, 0.0 }
 0x4fc   :  { %v1131_v15 = vsel %vm1077_vm1, %v1127_v13, 0.0 }
 0x4fd   :  { %v1132_v18 = vadd.f32 %v1131_v15, %v1130_v16 }
 0x559   :  { %v1072_v3 = vpop.permute.xlu0 %1071 }
 0x55a   :  { %v1078_v5 = vsel %vm1077_vm1, %v1072_v3, 0.0 }
 0x55d   :  { %v1074_v4 = vpop.permute.xlu1 %1073 }
 0x55e   :  { %v1079_v6 = vsel %vm1077_vm1, %v1074_v4, 0.0 }
 0x55f   :  { %v1080_v7 = vadd.f32 %v1079_v6, %v1078_v5 }
 0x561   :  { %v1413_v8 = vpop.permute.xlu1 %1412  ;;  %1081 = vadd.xlane.f32.xlu1 %v1080_v7 }
 0x562   :  { %v1415_v17 = vunpack.i.h.bf16 %v1413_v8  ;;  %v1414_v9 = vunpack.i.l.bf16 %v1413_v8 }
 0x564   :  { %v1100_v10 = vsel %vm1077_vm1, %v1414_v9, 0.0  ;;  %v1101_v11 = vsel %vm1077_vm1, %v1415_v17, 0.0 }
 0x565   :  { %v1102_v12 = vadd.f32 %v1101_v11, %v1100_v10 }
 0x567   :  { %1103 = vadd.xlane.f32.xlu0 %v1102_v12 }
 0x56b   :  { %1117 = vadd.xlane.f32.xlu0 %v2111_v25 }
 0x56f   :  { %1133 = vadd.xlane.f32.xlu0 %v1132_v18 }
 0x5ee   :  { %v1082_v20 = vpop.xlane.xlu1 %1081 }
 0x5ef   :  { %v1083_v21 = vrot.slane %v1082_v20, 4 }
 0x5f1   :  { %v1084_v22 = vadd.f32 %v1083_v21, %v1082_v20 }
 0x5f3   :  { %v1085_v23 = vrot.slane %v1084_v22, 2 }
 0x5f4   :  { %v1104_v24 = vpop.xlane.xlu0 %1103 }
 0x5f5   :  { %v1105_v26 = vrot.slane %v1104_v24, 4  ;;  %v1086_v27 = vadd.f32 %v1085_v23, %v1084_v22 }
 0x5f7   :  { %v1106_v28 = vadd.f32 %v1105_v26, %v1104_v24  ;;  %v1087_v29 = vrot.slane %v1086_v27, 1 }
 0x5f8   :  { %v1118_v30 = vpop.xlane.xlu0 %1117 }
 0x5f9   :  { %v1107_v31 = vrot.slane %v1106_v28, 2  ;;  %v1119_v32 = vrot.slane %v1118_v30, 4  ;;  %v1088_v33 = vadd.f32 %v1087_v29, %v1086_v27 }
 0x5fb   :  { %v1120_v39 = vadd.f32 %v1119_v32, %v1118_v30  ;;  %1383 = vpush %v1088_v33  ;;  %v1108_v25 = vadd.f32 %v1107_v31, %v1106_v28 }
 0x5fc   :  { %v1134_v40 = vpop.xlane.xlu0 %1133 }
 0x5fd   :  { %v1121_v41 = vrot.slane %v1120_v39, 2  ;;  %v1135_v42 = vrot.slane %v1134_v40, 4  ;;  %v1109_v43 = vrot.slane %v1108_v25, 1 }
 0x5ff   :  { %v1136_v44 = vadd.f32 %v1135_v42, %v1134_v40  ;;  %v1110_v45 = vadd.f32 %v1109_v43, %v1108_v25  ;;  %v1122_v46 = vadd.f32 %v1121_v41, %v1120_v39 }
 0x601   :  { %v1137_v47 = vrot.slane %v1136_v44, 2  ;;  %1385 = vpush %v1110_v45  ;;  %v1123_v48 = vrot.slane %v1122_v46, 1 }
 0x603   :  { %v1138_v49 = vadd.f32 %v1137_v47, %v1136_v44  ;;  %v1124_v50 = vadd.f32 %v1123_v48, %v1122_v46 }
 0x605   :  { %1387 = vpush %v1124_v50  ;;  %v1139_v51 = vrot.slane %v1138_v49, 1 }
 0x607   :  { %v1140_v52 = vadd.f32 %v1139_v51, %v1138_v49 }
 0x609   :  { %1389 = vpush %v1140_v52 }
 0x62c   :  { %s1384_s23 = spop %1383 }
 0x62d   :  { %v1145_v54 = vstv %s1384_s23 }
 0x62e   :  { %v1146_v57 = vsel %vm1144_vm4, %v1145_v54, 0.0 }
 0x632   :  { %s1386_s4 = spop %1385 }
 0x633   :  { %v1148_v55 = vstv %s1386_s4 }
 0x634   :  { %v1149_v58 = vsel %vm1147_vm5, %v1148_v55, %v1146_v57 }
 0x636   :  { %s1388_s0 = spop %1387 }
 0x637   :  { %v1151_v56 = vstv %s1388_s0 }
 0x638   :  { %v1152_v59 = vsel %vm1150_vm6, %v1151_v56, %v1149_v58 }
 0x63a   :  { %s1390_s1 = spop %1389 }
 0x63b   :  { %v1154_v34 = vstv %s1390_s1 }
 0x63c   :  { %v1155_v60 = vsel %vm1153_vm7, %v1154_v34, %v1152_v59 }
 0x63d   :  { %1156 = vst [vmem:[#allocation20] sm:$0xff] %v1155_v60 }
 0x63e   :  { %1767 = shalt.err (!%p1764_p8)
}
 0x63f   :  { %s1768_s5 = scalar_lea.hbm %s2150_s11, 128 }
 0x640   :  { %p1769_p9 = scmp.ne.s32.totalorder %s2150_s11, %s1768_s5  ;;  %p1772_p10 = scmp.lt.u32.totalorder %s1768_s5, %s2150_s11 }
 0x642   :  { %p1774_p11 = pnand %p1772_p10, %p1769_p9 }
 0x644   :  { %1777 = shalt.err (!%p1774_p11)
}
 0x645   :  { %1166 = dma.vmem_to_hbm [thread:$0]  %s1164_s24, 128, %s2150_s11, [#allocation4]  }
 0x646   :  { %1790 = dma.done.wait [#allocation4], 128  }
 0x647   :  { %1791 = vsyncadd [#allocation4], 4294967168 }
 0x648   :  { %1170 = vsyncpa [#allocation3], 1 }
 0x649   :  { %1171 = vsyncpa [#allocation6], 1 }
 0x64a   :  { %1172 = vsyncpa [#allocation9], 1 }
 0x64b   :  { %1173 = vsyncpa [#allocation12], 1 }
 0x64c   :  { %1174 = vsyncpa [#allocation15], 1 }
 0x64d   :  { %1175 = vsyncpa [#allocation18], 1 }
 0x64e   :  { %1176 = vsyncpa [#allocation4], 1 }

// kernel: tpu_custom_call.1
= control target key start
LH: loop header
LB: loop body
LE: loop exit
PB: predicated region body
PF: predicated region fallthrough
CT: control target
= control target key end

     0   :  { %16 = vsyncpa [#allocation3], 0  ;;  %s2139_s0 = inlined_call_operand.hbm [shape: bf16[16,128], index: 0, kind: input, shape index: {}]   ;;  %s2140_s1 = inlined_call_operand.hbm [shape: bf16[128,384], index: 1, kind: input, shape index: {}]   ;;  %s2141_s2 = inlined_call_operand.hbm [shape: f32[1,384], index: 2, kind: input, shape index: {}]   ;;  %s2142_s3 = inlined_call_operand.hbm [shape: bf16[128,128], index: 3, kind: input, shape index: {}]   ;;  %s2143_s4 = inlined_call_operand.hbm [shape: f32[1,128], index: 4, kind: input, shape index: {}]   ;;  %s2144_s5 = inlined_call_operand.hbm [shape: bf16[128,128], index: 5, kind: input, shape index: {}]   ;;  %s2145_s6 = inlined_call_operand.hbm [shape: f32[1,128], index: 6, kind: input, shape index: {}]   ;;  %s2146_s7 = inlined_call_operand.hbm [shape: bf16[128,128], index: 7, kind: input, shape index: {}]   ;;  %s2147_s8 = inlined_call_operand.hbm [shape: f32[1,128], index: 8, kind: input, shape index: {}]   ;;  %s2148_s9 = inlined_call_operand.hbm [shape: bf16[128,128], index: 9, kind: input, shape index: {}]   ;;  %s2149_s10 = inlined_call_operand.hbm [shape: f32[1,128], index: 10, kind: input, shape index: {}]   ;;  %s2150_s11 = inlined_call_operand.hbm [shape: f32[8,128], index: 11, kind: output, shape index: {}]  }
   0x1   :  { %17 = vsyncpa [#allocation6], 0 }
   0x2   :  { %18 = vsyncpa [#allocation9], 0 }
   0x3   :  { %19 = vsyncpa [#allocation12], 0 }
   0x4   :  { %20 = vsyncpa [#allocation15], 0 }
   0x5   :  { %21 = vsyncpa [#allocation18], 0 }
   0x6   :  { %22 = vsyncpa [#allocation4], 0  ;;  %s1792_s17 = smov [#allocation5]   ;;  %s1514_s21 = scalar_lea.hbm %s2140_s1, 3072 }
   0x7   :  { %s40_s18 = sshll.u32 %s1792_s17, 4  ;;  %p1515_p0 = scmp.ne.s32.totalorder %s2140_s1, %s1514_s21  ;;  %s41_s18 = int_to_ptr.vmem [resolvable:$true] %s40_s18 }
   0x8   :  { %p1518_p1 = scmp.lt.u32.totalorder %s1514_s21, %s2140_s1 }
   0xa   :  { %p1520_p2 = pnand %p1518_p1, %p1515_p0 }
   0xc   :  { %1523 = shalt.err (!%p1520_p2)
}
   0xd   :  { %s1524_s26 = scalar_lea.vmem %s41_s18, 3072  ;;  %p1529_p4 = scmp.lt.s32.totalorder %s41_s18, %s41_s18 }
   0xe   :  { %p1525_p3 = scmp.ne.s32.totalorder %s41_s18, %s1524_s26  ;;  %p1530_p5 = scmp.lt.s32.totalorder %s1524_s26, %s1524_s26 }
  0x10   :  { %p1531_p6 = por %p1530_p5, %p1529_p4 }
  0x12   :  { %p1532_p7 = pnand %p1531_p6, %p1525_p3 }
  0x14   :  { %1535 = shalt.err (!%p1532_p7)
}
  0x15   :  { %s1793_s27 = smov 192   ;;  %s1794_s28 = smov 12  }
  0x16   :  { %46 = dma.hbm_to_vmem [thread:$0]  %s2140_s1, 3072, %s41_s18, [#allocation6], %s1793_s27, %s1793_s27, %s1794_s28  }
  0x17   :  { %s1795_s12 = smov [#allocation8]   ;;  %s1796_s14 = smov [#allocation11]  }
  0x18   :  { %s62_s13 = sshll.u32 %s1795_s12, 4  ;;  %s84_s15 = sshll.u32 %s1796_s14, 4  ;;  %s63_s13 = int_to_ptr.vmem [resolvable:$true] %s62_s13  ;;  %s85_s15 = int_to_ptr.vmem [resolvable:$true] %s84_s15 }
  0x19   :  { %s1536_s19 = scalar_lea.hbm %s2142_s3, 1024 }
  0x1a   :  { %p1537_p8 = scmp.ne.s32.totalorder %s2142_s3, %s1536_s19  ;;  %p1540_p9 = scmp.lt.u32.totalorder %s1536_s19, %s2142_s3 }
  0x1c   :  { %p1542_p10 = pnand %p1540_p9, %p1537_p8 }
  0x1e   :  { %1545 = shalt.err (!%p1542_p10)
}
  0x1f   :  { %s1546_s1 = scalar_lea.vmem %s63_s13, 1024  ;;  %p1551_p12 = scmp.lt.s32.totalorder %s63_s13, %s63_s13 }
  0x20   :  { %p1547_p11 = scmp.ne.s32.totalorder %s63_s13, %s1546_s1  ;;  %p1552_p13 = scmp.lt.s32.totalorder %s1546_s1, %s1546_s1 }
  0x22   :  { %p1553_p0 = por %p1552_p13, %p1551_p12 }
  0x24   :  { %p1554_p1 = pnand %p1553_p0, %p1547_p11 }
  0x26   :  { %1557 = shalt.err (!%p1554_p1)
}
  0x27   :  { %s1797_s18 = smov 64   ;;  %s1798_s24 = smov 4  }
  0x28   :  { %68 = dma.hbm_to_vmem [thread:$0]  %s2142_s3, 1024, %s63_s13, [#allocation9], %s1797_s18, %s1797_s18, %s1798_s24  }
  0x29   :  { %s1558_s29 = scalar_lea.hbm %s2144_s5, 1024 }
  0x2a   :  { %p1559_p2 = scmp.ne.s32.totalorder %s2144_s5, %s1558_s29  ;;  %p1562_p3 = scmp.lt.u32.totalorder %s1558_s29, %s2144_s5 }
  0x2c   :  { %p1564_p4 = pnand %p1562_p3, %p1559_p2 }
  0x2e   :  { %1567 = shalt.err (!%p1564_p4)
}
  0x2f   :  { %s1568_s17 = scalar_lea.vmem %s85_s15, 1024  ;;  %p1573_p6 = scmp.lt.s32.totalorder %s85_s15, %s85_s15 }
  0x30   :  { %p1569_p5 = scmp.ne.s32.totalorder %s85_s15, %s1568_s17  ;;  %p1574_p7 = scmp.lt.s32.totalorder %s1568_s17, %s1568_s17 }
  0x32   :  { %p1575_p8 = por %p1574_p7, %p1573_p6 }
  0x34   :  { %p1576_p9 = pnand %p1575_p8, %p1569_p5 }
  0x36   :  { %1579 = shalt.err (!%p1576_p9)
}
  0x37   :  { %90 = dma.hbm_to_vmem [thread:$0]  %s2144_s5, 1024, %s85_s15, [#allocation12], %s1797_s18, %s1797_s18, %s1798_s24  }
  0x38   :  { %s1799_s19 = smov [#allocation14]   ;;  %s1800_s21 = smov [#allocation17]  }
  0x39   :  { %s106_s20 = sshll.u32 %s1799_s19, 4  ;;  %s128_s22 = sshll.u32 %s1800_s21, 4  ;;  %s107_s20 = int_to_ptr.vmem [resolvable:$true] %s106_s20  ;;  %s129_s22 = int_to_ptr.vmem [resolvable:$true] %s128_s22 }
  0x3a   :  { %s1580_s25 = scalar_lea.hbm %s2146_s7, 1024 }
  0x3b   :  { %p1581_p10 = scmp.ne.s32.totalorder %s2146_s7, %s1580_s25  ;;  %p1584_p11 = scmp.lt.u32.totalorder %s1580_s25, %s2146_s7 }
  0x3d   :  { %p1586_p12 = pnand %p1584_p11, %p1581_p10 }
  0x3f   :  { %1589 = shalt.err (!%p1586_p12)
}
  0x40   :  { %s1590_s5 = scalar_lea.vmem %s107_s20, 1024  ;;  %p1595_p0 = scmp.lt.s32.totalorder %s107_s20, %s107_s20 }
  0x41   :  { %p1591_p13 = scmp.ne.s32.totalorder %s107_s20, %s1590_s5  ;;  %p1596_p1 = scmp.lt.s32.totalorder %s1590_s5, %s1590_s5 }
  0x43   :  { %p1597_p2 = por %p1596_p1, %p1595_p0 }
  0x45   :  { %p1598_p3 = pnand %p1597_p2, %p1591_p13 }
  0x47   :  { %1601 = shalt.err (!%p1598_p3)
}
  0x48   :  { %112 = dma.hbm_to_vmem [thread:$0]  %s2146_s7, 1024, %s107_s20, [#allocation15], %s1797_s18, %s1797_s18, %s1798_s24  }
  0x49   :  { %s1602_s16 = scalar_lea.hbm %s2148_s9, 1024 }
  0x4a   :  { %p1603_p4 = scmp.ne.s32.totalorder %s2148_s9, %s1602_s16  ;;  %p1606_p5 = scmp.lt.u32.totalorder %s1602_s16, %s2148_s9 }
  0x4c   :  { %p1608_p6 = pnand %p1606_p5, %p1603_p4 }
  0x4e   :  { %1611 = shalt.err (!%p1608_p6)
}
  0x4f   :  { %s1612_s21 = scalar_lea.vmem %s129_s22, 1024  ;;  %p1617_p8 = scmp.lt.s32.totalorder %s129_s22, %s129_s22 }
  0x50   :  { %p1613_p7 = scmp.ne.s32.totalorder %s129_s22, %s1612_s21  ;;  %p1618_p9 = scmp.lt.s32.totalorder %s1612_s21, %s1612_s21 }
  0x52   :  { %p1619_p10 = por %p1618_p9, %p1617_p8 }
  0x54   :  { %p1620_p11 = pnand %p1619_p10, %p1613_p7 }
  0x56   :  { %1623 = shalt.err (!%p1620_p11)
}
  0x57   :  { %134 = dma.hbm_to_vmem [thread:$0]  %s2148_s9, 1024, %s129_s22, [#allocation18], %s1797_s18, %s1797_s18, %s1798_s24  }
  0x58   :  { %s1801_s23 = smov [#allocation2]   ;;  %s1802_s25 = smov [#allocation7]  }
  0x59   :  { %s28_s1 = sshll.u32 %s1801_s23, 4  ;;  %s53_s26 = sshll.u32 %s1802_s25, 4  ;;  %s29_s1 = int_to_ptr.vmem [resolvable:$true] %s28_s1  ;;  %s54_s26 = int_to_ptr.vmem [resolvable:$true] %s53_s26 }
  0x5a   :  { %s1624_s29 = scalar_lea.hbm %s2139_s0, 128 }
  0x5b   :  { %p1625_p12 = scmp.ne.s32.totalorder %s2139_s0, %s1624_s29  ;;  %p1628_p13 = scmp.lt.u32.totalorder %s1624_s29, %s2139_s0 }
  0x5d   :  { %p1630_p0 = pnand %p1628_p13, %p1625_p12 }
  0x5f   :  { %1633 = shalt.err (!%p1630_p0)
}
  0x60   :  { %s1634_s9 = scalar_lea.vmem %s29_s1, 128  ;;  %p1639_p2 = scmp.lt.s32.totalorder %s29_s1, %s29_s1 }
  0x61   :  { %p1635_p1 = scmp.ne.s32.totalorder %s29_s1, %s1634_s9  ;;  %p1640_p3 = scmp.lt.s32.totalorder %s1634_s9, %s1634_s9 }
  0x63   :  { %p1641_p4 = por %p1640_p3, %p1639_p2 }
  0x65   :  { %p1642_p5 = pnand %p1641_p4, %p1635_p1 }
  0x67   :  { %1645 = shalt.err (!%p1642_p5)
}
  0x68   :  { %34 = dma.hbm_to_vmem [thread:$0]  %s2139_s0, 128, %s29_s1, [#allocation3], %s1797_s18, %s1797_s18, %s1798_s24  }
  0x69   :  { %s1646_s3 = scalar_lea.hbm %s2141_s2, 48 }
  0x6a   :  { %p1647_p6 = scmp.ne.s32.totalorder %s2141_s2, %s1646_s3  ;;  %p1650_p7 = scmp.lt.u32.totalorder %s1646_s3, %s2141_s2 }
  0x6c   :  { %p1652_p8 = pnand %p1650_p7, %p1647_p6 }
  0x6e   :  { %1655 = shalt.err (!%p1652_p8)
}
  0x6f   :  { %s1656_s20 = scalar_lea.vmem %s54_s26, 48  ;;  %s1660_s23 = scalar_lea.vmem %s54_s26, 64 }
  0x70   :  { %p1657_p9 = scmp.ne.s32.totalorder %s54_s26, %s1656_s20  ;;  %p1661_p10 = scmp.lt.s32.totalorder %s54_s26, %s54_s26 }
  0x71   :  { %p1662_p11 = scmp.lt.s32.totalorder %s1660_s23, %s1656_s20 }
  0x73   :  { %p1663_p12 = por %p1662_p11, %p1661_p10 }
  0x75   :  { %p1664_p13 = pnand %p1663_p12, %p1657_p9 }
  0x77   :  { %1667 = shalt.err (!%p1664_p13)
}
  0x78   :  { %56 = dma.hbm_to_vmem [thread:$0]  %s2141_s2, 48, %s54_s26, [#allocation6]  }
  0x79   :  { %s1803_s24 = smov [#allocation10]   ;;  %s1804_s25 = smov [#allocation13]  }
  0x7a   :  { %s75_s1 = sshll.u32 %s1803_s24, 4  ;;  %s97_s27 = sshll.u32 %s1804_s25, 4  ;;  %s76_s1 = int_to_ptr.vmem [resolvable:$true] %s75_s1  ;;  %s98_s27 = int_to_ptr.vmem [resolvable:$true] %s97_s27 }
  0x7b   :  { %s1668_s5 = scalar_lea.hbm %s2143_s4, 16 }
  0x7c   :  { %p1669_p0 = scmp.ne.s32.totalorder %s2143_s4, %s1668_s5  ;;  %p1672_p1 = scmp.lt.u32.totalorder %s1668_s5, %s2143_s4 }
  0x7e   :  { %p1674_p2 = pnand %p1672_p1, %p1669_p0 }
  0x80   :  { %1677 = shalt.err (!%p1674_p2)
}
  0x81   :  { %s1678_s2 = scalar_lea.vmem %s76_s1, 16  ;;  %s1682_s26 = scalar_lea.vmem %s76_s1, 32 }
  0x82   :  { %p1679_p3 = scmp.ne.s32.totalorder %s76_s1, %s1678_s2  ;;  %p1683_p4 = scmp.lt.s32.totalorder %s76_s1, %s76_s1 }
  0x83   :  { %p1684_p5 = scmp.lt.s32.totalorder %s1682_s26, %s1678_s2 }
  0x85   :  { %p1685_p6 = por %p1684_p5, %p1683_p4 }
  0x87   :  { %p1686_p7 = pnand %p1685_p6, %p1679_p3 }
  0x89   :  { %1689 = shalt.err (!%p1686_p7)
}
  0x8a   :  { %78 = dma.hbm_to_vmem [thread:$0]  %s2143_s4, 16, %s76_s1, [#allocation9]  }
  0x8b   :  { %s1690_s3 = scalar_lea.hbm %s2145_s6, 16 }
  0x8c   :  { %p1691_p8 = scmp.ne.s32.totalorder %s2145_s6, %s1690_s3  ;;  %p1694_p9 = scmp.lt.u32.totalorder %s1690_s3, %s2145_s6 }
  0x8e   :  { %p1696_p10 = pnand %p1694_p9, %p1691_p8 }
  0x90   :  { %1699 = shalt.err (!%p1696_p10)
}
  0x91   :  { %s1700_s20 = scalar_lea.vmem %s98_s27, 16  ;;  %s1704_s23 = scalar_lea.vmem %s98_s27, 32 }
  0x92   :  { %p1701_p11 = scmp.ne.s32.totalorder %s98_s27, %s1700_s20  ;;  %p1705_p12 = scmp.lt.s32.totalorder %s98_s27, %s98_s27 }
  0x93   :  { %p1706_p13 = scmp.lt.s32.totalorder %s1704_s23, %s1700_s20 }
  0x95   :  { %p1707_p0 = por %p1706_p13, %p1705_p12 }
  0x97   :  { %p1708_p1 = pnand %p1707_p0, %p1701_p11 }
  0x99   :  { %1711 = shalt.err (!%p1708_p1)
}
  0x9a   :  { %100 = dma.hbm_to_vmem [thread:$0]  %s2145_s6, 16, %s98_s27, [#allocation12]  }
  0x9b   :  { %s1805_s18 = smov [#allocation16]   ;;  %s1806_s1 = smov [#allocation19]  }
  0x9c   :  { %s119_s24 = sshll.u32 %s1805_s18, 4  ;;  %s141_s25 = sshll.u32 %s1806_s1, 4  ;;  %s120_s24 = int_to_ptr.vmem [resolvable:$true] %s119_s24  ;;  %s142_s25 = int_to_ptr.vmem [resolvable:$true] %s141_s25 }
  0x9d   :  { %s1712_s5 = scalar_lea.hbm %s2147_s8, 16 }
  0x9e   :  { %p1713_p2 = scmp.ne.s32.totalorder %s2147_s8, %s1712_s5  ;;  %p1716_p3 = scmp.lt.u32.totalorder %s1712_s5, %s2147_s8 }
  0xa0   :  { %p1718_p4 = pnand %p1716_p3, %p1713_p2 }
  0xa2   :  { %1721 = shalt.err (!%p1718_p4)
}
  0xa3   :  { %s1722_s6 = scalar_lea.vmem %s120_s24, 16  ;;  %s1726_s27 = scalar_lea.vmem %s120_s24, 32 }
  0xa4   :  { %p1723_p5 = scmp.ne.s32.totalorder %s120_s24, %s1722_s6  ;;  %p1727_p6 = scmp.lt.s32.totalorder %s120_s24, %s120_s24 }
  0xa5   :  { %p1728_p7 = scmp.lt.s32.totalorder %s1726_s27, %s1722_s6 }
  0xa7   :  { %p1729_p8 = por %p1728_p7, %p1727_p6 }
  0xa9   :  { %p1730_p9 = pnand %p1729_p8, %p1723_p5 }
  0xab   :  { %1733 = shalt.err (!%p1730_p9)
}
  0xac   :  { %122 = dma.hbm_to_vmem [thread:$0]  %s2147_s8, 16, %s120_s24, [#allocation15]  }
  0xad   :  { %s1734_s16 = scalar_lea.hbm %s2149_s10, 16 }
  0xae   :  { %p1735_p10 = scmp.ne.s32.totalorder %s2149_s10, %s1734_s16  ;;  %p1738_p11 = scmp.lt.u32.totalorder %s1734_s16, %s2149_s10 }
  0xb0   :  { %p1740_p12 = pnand %p1738_p11, %p1735_p10 }
  0xb2   :  { %1743 = shalt.err (!%p1740_p12)
}
  0xb3   :  { %s1744_s21 = scalar_lea.vmem %s142_s25, 16  ;;  %s1748_s7 = scalar_lea.vmem %s142_s25, 32 }
  0xb4   :  { %p1745_p13 = scmp.ne.s32.totalorder %s142_s25, %s1744_s21  ;;  %p1749_p0 = scmp.lt.s32.totalorder %s142_s25, %s142_s25 }
  0xb5   :  { %p1750_p1 = scmp.lt.s32.totalorder %s1748_s7, %s1744_s21 }
  0xb7   :  { %p1751_p2 = por %p1750_p1, %p1749_p0 }
  0xb9   :  { %p1752_p3 = pnand %p1751_p2, %p1745_p13 }
  0xbb   :  { %1755 = shalt.err (!%p1752_p3)
}
  0xbc   :  { %144 = dma.hbm_to_vmem [thread:$0]  %s2149_s10, 16, %s142_s25, [#allocation18]  }
  0xbd   :  { %1778 = dma.done.wait [#allocation3], 128  }
  0xbe   :  { %1779 = vsyncadd [#allocation3], 4294967168 }
  0xbf   :  { %1780 = dma.done.wait [#allocation6], 3120  }
  0xc0   :  { %1781 = vsyncadd [#allocation6], 4294964176 }
  0xc1   :  { %1782 = dma.done.wait [#allocation9], 1040  }
  0xc2   :  { %1783 = vsyncadd [#allocation9], 4294966256 }
  0xc3   :  { %1784 = dma.done.wait [#allocation12], 1040  }
  0xc4   :  { %1785 = vsyncadd [#allocation12], 4294966256 }
  0xc5   :  { %1786 = dma.done.wait [#allocation15], 1040  }
  0xc6   :  { %1787 = vsyncadd [#allocation15], 4294966256 }
  0xc7   :  { %1788 = dma.done.wait [#allocation18], 1040  }
  0xc8   :  { %1789 = vsyncadd [#allocation18], 4294966256  ;;  %v1807_v0 = vmov 0   ;;  %v1416_v1 = vld [vmem:[#allocation5 + $0x4] ss:$12 sps:$4 sm:$0xff]   ;;  %v2019_v17 = vld [vmem:[#allocation2] sm:$0xff]   ;;  %v230_v35 = vlaneseq }
  0xc9   :  { %411 = vmatprep.mubr.bf16.mxu0 %v1807_v0  ;;  %v1418_v2 = vld [vmem:[#allocation5] ss:$12 sps:$4 sm:$0xff]   ;;  %379 = vmatprep.subr.bf16.mxu0 %v1416_v1  ;;  %v1419_v3 = vld [vmem:[#allocation5 + $0x1c] ss:$12 sps:$4 sm:$0xff]   ;;  %v1421_v4 = vld [vmem:[#allocation5 + $0x18] ss:$12 sps:$4 sm:$0xff]  }
  0xca   :  { %380 = vmatpush1.bf16.msra.mxu0 %v1418_v2  ;;  %v1422_v5 = vld [vmem:[#allocation5 + $0x34] ss:$12 sps:$4 sm:$0xff]   ;;  %v1424_v6 = vld [vmem:[#allocation5 + $0x30] ss:$12 sps:$4 sm:$0xff]   ;;  %v1425_v7 = vld [vmem:[#allocation5 + $0x4c] ss:$12 sps:$4 sm:$0xff]  }
  0xcb   :  { %381 = vmatprep.subr.bf16.mxu0 %v1419_v3  ;;  %v1427_v8 = vld [vmem:[#allocation5 + $0x48] ss:$12 sps:$4 sm:$0xff]   ;;  %v1428_v9 = vld [vmem:[#allocation5 + $0x64] ss:$12 sps:$4 sm:$0xff]   ;;  %v1430_v10 = vld [vmem:[#allocation5 + $0x60] ss:$12 sps:$4 sm:$0xff]  }
  0xcc   :  { %v1431_v11 = vld [vmem:[#allocation5 + $0x7c] ss:$12 sps:$4 sm:$0xff]   ;;  %v1433_v12 = vld [vmem:[#allocation5 + $0x78] ss:$12 sps:$4 sm:$0xff]   ;;  %v1434_v13 = vld [vmem:[#allocation5 + $0x94] ss:$12 sps:$4 sm:$0xff]  }
  0xcd   :  { %v1436_v14 = vld [vmem:[#allocation5 + $0x90] ss:$12 sps:$4 sm:$0xff]   ;;  %v1437_v15 = vld [vmem:[#allocation5 + $0xac] ss:$12 sps:$4 sm:$0xff]   ;;  %v1439_v16 = vld [vmem:[#allocation5 + $0xa8] ss:$12 sps:$4 sm:$0xff]  }
  0xce   :  { %382 = vmatpush1.bf16.msra.mxu0 %v1421_v4  ;;  %v1441_v18 = vld [vmem:[#allocation8] sm:$0xff]   ;;  %v1808_v19 = vmov 0.0   ;;  %v1442_v20 = vld [vmem:[#allocation8 + $0x8] sm:$0xff]   ;;  %v1443_v21 = vld [vmem:[#allocation8 + $0x10] sm:$0xff]   ;;  %vm1809_vm0 = vmmov 0   ;;  %v2048_v36 = vshrl.u32 %v230_v35, 7 }
  0xcf   :  { %383 = vmatprep.subr.bf16.mxu0 %v1422_v5  ;;  %1283 = vmatprep.subr.bf16.mxu1 %v1808_v19  ;;  %v1444_v22 = vld [vmem:[#allocation8 + $0x18] sm:$0xff]   ;;  %v1445_v23 = vld [vmem:[#allocation8 + $0x20] sm:$0xff]   ;;  %v1446_v24 = vld [vmem:[#allocation8 + $0x28] sm:$0xff]   ;;  %vm1077_vm1 = vcmask 7168   ;;  %s1810_s10 = smov 32   ;;  %s1811_s18 = smov [#allocation20]  }
  0xd0   :  { %v1447_v25 = vld [vmem:[#allocation8 + $0x30] sm:$0xff]   ;;  %v1448_v26 = vld [vmem:[#allocation8 + $0x38] sm:$0xff]   ;;  %1299 = vmatprep.mubr.msk.bf16.mxu1 %vm1809_vm0, %v1808_v19  ;;  %v232_v37 = vsub.s32 0, %v2048_v36  ;;  %v236_v39 = vsub.s32 1, %v2048_v36  ;;  %s1163_s24 = sshll.u32 %s1811_s18, 4  ;;  %s1164_s24 = int_to_ptr.vmem [resolvable:$true] %s1163_s24 }
  0xd1   :  { %v1449_v27 = vld [vmem:[#allocation5 + $0x8] ss:$12 sps:$4 sm:$0xff]   ;;  %v1451_v28 = vld [vmem:[#allocation5 + $0x20] ss:$12 sps:$4 sm:$0xff]   ;;  %v1453_v29 = vld [vmem:[#allocation5 + $0x38] ss:$12 sps:$4 sm:$0xff]   ;;  %p1761_p5 = scmp.lt.s32.totalorder %s1164_s24, %s1164_s24 }
  0xd2   :  { %384 = vmatpush1.bf16.msra.mxu0 %v1424_v6  ;;  %1284 = vmatpush3.bf16.msra.mxu1 %v1449_v27  ;;  %v1455_v30 = vld [vmem:[#allocation5 + $0x50] ss:$12 sps:$4 sm:$0xff]   ;;  %v1457_v31 = vld [vmem:[#allocation5 + $0x68] ss:$12 sps:$4 sm:$0xff]   ;;  %v1459_v32 = vld [vmem:[#allocation5 + $0x80] ss:$12 sps:$4 sm:$0xff]  }
  0xd3   :  { %385 = vmatprep.subr.bf16.mxu0 %v1425_v7  ;;  %1285 = vmatprep.subr.bf16.mxu1 %v1808_v19  ;;  %v1461_v33 = vld [vmem:[#allocation5 + $0x98] ss:$12 sps:$4 sm:$0xff]   ;;  %v1463_v34 = vld [vmem:[#allocation5 + $0xb0] ss:$12 sps:$4 sm:$0xff]   ;;  %v2051_v38 = vld [vmem:[#allocation7] sm:$0x7] }
  0xd4   :  { %v233_v40 = vrot.slane %v2051_v38, %v232_v37  ;;  %v237_v41 = vrot.slane %v2051_v38, %v236_v39  ;;  %v1464_v37 = vld [vmem:[#allocation14 + $0x38] sm:$0xff]   ;;  %s1756_s25 = scalar_lea.vmem %s1164_s24, 128 }
  0xd5   :  { %v1465_v39 = vld [vmem:[#allocation11] sm:$0xff]   ;;  %p1757_p4 = scmp.ne.s32.totalorder %s1164_s24, %s1756_s25  ;;  %p1762_p6 = scmp.lt.s32.totalorder %s1756_s25, %s1756_s25 }
  0xd6   :  { %386 = vmatpush1.bf16.msra.mxu0 %v1427_v8  ;;  %1286 = vmatpush3.bf16.msra.mxu1 %v1451_v28 }
  0xd7   :  { %387 = vmatprep.subr.bf16.mxu0 %v1428_v9  ;;  %1287 = vmatprep.subr.bf16.mxu1 %v1808_v19  ;;  %p1763_p7 = por %p1762_p6, %p1761_p5 }
  0xd9   :  { %p1764_p8 = pnand %p1763_p7, %p1757_p4 }
  0xda   :  { %388 = vmatpush1.bf16.msra.mxu0 %v1430_v10  ;;  %1288 = vmatpush3.bf16.msra.mxu1 %v1453_v29  ;;  %v1452_v29 = vld [vmem:[#allocation14 + $0x8] sm:$0xff]  }
  0xdb   :  { %389 = vmatprep.subr.bf16.mxu0 %v1431_v11  ;;  %1289 = vmatprep.subr.bf16.mxu1 %v1808_v19 }
  0xde   :  { %390 = vmatpush1.bf16.msra.mxu0 %v1433_v12  ;;  %1290 = vmatpush3.bf16.msra.mxu1 %v1455_v30  ;;  %v1454_v30 = vld [vmem:[#allocation14 + $0x10] sm:$0xff]  }
  0xdf   :  { %391 = vmatprep.subr.bf16.mxu0 %v1434_v13  ;;  %1291 = vmatprep.subr.bf16.mxu1 %v1808_v19 }
  0xe2   :  { %392 = vmatpush1.bf16.msra.mxu0 %v1436_v14  ;;  %1292 = vmatpush3.bf16.msra.mxu1 %v1457_v31  ;;  %v1456_v31 = vld [vmem:[#allocation14 + $0x18] sm:$0xff]  }
  0xe3   :  { %393 = vmatprep.subr.bf16.mxu0 %v1437_v15  ;;  %1293 = vmatprep.subr.bf16.mxu1 %v1808_v19 }
  0xe6   :  { %394 = vmatpush1.bf16.msra.mxu0 %v1439_v16  ;;  %1294 = vmatpush3.bf16.msra.mxu1 %v1459_v32  ;;  %v1458_v32 = vld [vmem:[#allocation14 + $0x20] sm:$0xff]  }
  0xe7   :  { %1303 = vmatprep.subr.bf16.mxu0 %v1808_v19  ;;  %1295 = vmatprep.subr.bf16.mxu1 %v1808_v19 }
  0xe9   :  { %412 = vmatmul.mubr.bf16.vlgmr.msra.gmra.mrb[0].mxu0 %v2019_v17 }
  0xea   :  { %1304 = vmatpush3.bf16.msra.mxu0 %v1441_v18  ;;  %1319 = vmatprep.mubr.msk.bf16.mxu0 %vm1809_vm0, %v1808_v19 }
  0xeb   :  { %1305 = vmatprep.subr.bf16.mxu0 %v1808_v19  ;;  %1296 = vmatpush3.bf16.msra.mxu1 %v1461_v33  ;;  %v1460_v33 = vld [vmem:[#allocation14 + $0x28] sm:$0xff]  }
  0xec   :  { %1297 = vmatprep.subr.bf16.mxu1 %v1808_v19 }
  0xee   :  { %1306 = vmatpush3.bf16.msra.mxu0 %v1442_v20 }
  0xef   :  { %1307 = vmatprep.subr.bf16.mxu0 %v1808_v19  ;;  %1298 = vmatpush3.bf16.msra.mxu1 %v1463_v34  ;;  %v1462_v34 = vld [vmem:[#allocation14 + $0x30] sm:$0xff]  }
  0xf0   :  { %1323 = vmatprep.subr.bf16.mxu1 %v1808_v19 }
  0xf2   :  { %1308 = vmatpush3.bf16.msra.mxu0 %v1443_v21  ;;  %1300 = vmatmul.mubr.bf16.vlgmr.msra.gmra.mrb[0].mxu1 %v2019_v17 }
  0xf3   :  { %1309 = vmatprep.subr.bf16.mxu0 %v1808_v19  ;;  %1339 = vmatprep.mubr.msk.bf16.mxu1 %vm1809_vm0, %v1808_v19 }
  0xf4   :  { %1324 = vmatpush3.bf16.msra.mxu1 %v1465_v39  ;;  %v1473_v39 = vld [vmem:[#allocation17] sm:$0xff]  }
  0xf5   :  { %1325 = vmatprep.subr.bf16.mxu1 %v1808_v19 }
  0xf6   :  { %1310 = vmatpush3.bf16.msra.mxu0 %v1444_v22 }
  0xf7   :  { %1311 = vmatprep.subr.bf16.mxu0 %v1808_v19 }
  0xfa   :  { %1312 = vmatpush3.bf16.msra.mxu0 %v1445_v23 }
  0xfb   :  { %1313 = vmatprep.subr.bf16.mxu0 %v1808_v19 }
  0xfe   :  { %1314 = vmatpush3.bf16.msra.mxu0 %v1446_v24  ;;  %v1450_v24 = vld [vmem:[#allocation14] sm:$0xff]  }
  0xff   :  { %1315 = vmatprep.subr.bf16.mxu0 %v1808_v19 }
 0x102   :  { %1316 = vmatpush3.bf16.msra.mxu0 %v1447_v25 }
 0x103   :  { %1317 = vmatprep.subr.bf16.mxu0 %v1808_v19 }
 0x106   :  { %1318 = vmatpush3.bf16.msra.mxu0 %v1448_v26 }
 0x107   :  { %1343 = vmatprep.subr.bf16.mxu0 %v1808_v19 }
 0x1bc   :  { %v413_v42 = vpop.f32.mrb[0].mxu0 }
 0x1bd   :  { %v414_v43 = vadd.f32 %v413_v42, %v233_v40  ;;  %v415_v44 = vpop.f32.mrb[1].mxu0  ;;  %v1468_v42 = vld [vmem:[#allocation11 + $0x18] sm:$0xff]  }
 0x1be   :  { %v416_v45 = vadd.f32 %v415_v44, %v237_v41  ;;  %v417_v46 = vpop.f32.mrb[2].mxu0  ;;  %v1470_v44 = vld [vmem:[#allocation11 + $0x28] sm:$0xff]  }
 0x1bf   :  { %v463_v47 = vmul.f32 %v414_v43, %v414_v43  ;;  %v418_v48 = vadd.f32 %v417_v46, %v233_v40  ;;  %v419_v49 = vpop.f32.mrb[3].mxu0  ;;  %v1466_v40 = vld [vmem:[#allocation11 + $0x8] sm:$0xff]   ;;  %v1472_v46 = vld [vmem:[#allocation11 + $0x38] sm:$0xff]  }
 0x1c0   :  { %v464_v50 = vmul.f32 %v416_v45, %v416_v45  ;;  %v420_v51 = vadd.f32 %v419_v49, %v237_v41  ;;  %1326 = vmatpush3.bf16.msra.mxu1 %v1466_v40  ;;  %v1467_v41 = vld [vmem:[#allocation11 + $0x10] sm:$0xff]  }
 0x1c1   :  { %v469_v52 = vmul.f32 %v463_v47, %v414_v43  ;;  %v466_v53 = vmul.f32 %v418_v48, %v418_v48  ;;  %1327 = vmatprep.subr.bf16.mxu1 %v1808_v19  ;;  %v240_v47 = vsub.s32 2, %v2048_v36 }
 0x1c2   :  { %v470_v54 = vmul.f32 %v464_v50, %v416_v45  ;;  %v467_v55 = vmul.f32 %v420_v51, %v420_v51 }
 0x1c3   :  { %v475_v56 = vmul.f32 0.044715, %v469_v52  ;;  %v472_v57 = vmul.f32 %v466_v53, %v418_v48 }
 0x1c4   :  { %v476_v58 = vmul.f32 0.044715, %v470_v54  ;;  %v473_v59 = vmul.f32 %v467_v55, %v420_v51  ;;  %1328 = vmatpush3.bf16.msra.mxu1 %v1467_v41 }
 0x1c5   :  { %v481_v60 = vadd.f32 %v475_v56, %v414_v43  ;;  %v478_v61 = vmul.f32 0.044715, %v472_v57  ;;  %1329 = vmatprep.subr.bf16.mxu1 %v1808_v19  ;;  %v456_v49 = vpop.f32.mrb[0].mxu1 }
 0x1c6   :  { %v479_v62 = vmul.f32 0.044715, %v473_v59  ;;  %v482_v63 = vadd.f32 %v476_v58, %v416_v45  ;;  %v1301_v50 = vpop.f32.mrb[1].mxu1 }
 0x1c7   :  { %v487_v0 = vmul.f32 0.7978846, %v481_v60  ;;  %v484_v1 = vadd.f32 %v478_v61, %v418_v48  ;;  %v459_v52 = vpop.f32.mrb[2].mxu1 }
 0x1c8   :  { %v485_v2 = vadd.f32 %v479_v62, %v420_v51  ;;  %v488_v3 = vmul.f32 0.7978846, %v482_v63  ;;  %1330 = vmatpush3.bf16.msra.mxu1 %v1468_v42  ;;  %v1302_v54 = vpop.f32.mrb[3].mxu1 }
 0x1c9   :  { %1482 = vtanh.f32 %v487_v0  ;;  %v490_v4 = vmul.f32 0.7978846, %v484_v1  ;;  %1331 = vmatprep.subr.bf16.mxu1 %v1808_v19 }
 0x1ca   :  { %v491_v5 = vmul.f32 0.7978846, %v485_v2  ;;  %1484 = vtanh.f32 %v488_v3 }
 0x1cb   :  { %1486 = vtanh.f32 %v490_v4 }
 0x1cc   :  { %1488 = vtanh.f32 %v491_v5 }
 0x1d3   :  { %v1483_v6 = vpop.eup %1482 }
 0x1d4   :  { %v1485_v7 = vpop.eup %1484  ;;  %v499_v8 = vadd.f32 1.0, %v1483_v6 }
 0x1d5   :  { %v1487_v9 = vpop.eup %1486  ;;  %v500_v10 = vadd.f32 1.0, %v1485_v7 }
 0x1d6   :  { %v1489_v11 = vpop.eup %1488  ;;  %v505_v12 = vmul.f32 0.5, %v499_v8  ;;  %v502_v13 = vadd.f32 1.0, %v1487_v9  ;;  %v1202_v8 = vld [vmem:[#allocation10] ss:$0 sm:$0xff] }
 0x1d7   :  { %v506_v14 = vmul.f32 0.5, %v500_v10  ;;  %v503_v15 = vadd.f32 1.0, %v1489_v11 }
 0x1d8   :  { %v508_v16 = vmul.f32 0.5, %v502_v13  ;;  %v511_v21 = vmul.f32 %v505_v12, %v414_v43  ;;  %v1469_v43 = vld [vmem:[#allocation11 + $0x20] sm:$0xff]  }
 0x1d9   :  { %v512_v18 = vmul.f32 %v506_v14, %v416_v45  ;;  %v509_v20 = vmul.f32 0.5, %v503_v15  ;;  %1332 = vmatpush3.bf16.msra.mxu1 %v1469_v43  ;;  %v1471_v45 = vld [vmem:[#allocation11 + $0x30] sm:$0xff]  }
 0x1da   :  { %v514_v22 = vmul.f32 %v508_v16, %v418_v48  ;;  %1333 = vmatprep.subr.bf16.mxu1 %v1808_v19  ;;  %v241_v48 = vrot.slane %v2051_v38, %v240_v47 }
 0x1db   :  { %v867_v23 = vmul.f32 %v512_v18, %v512_v18  ;;  %v515_v25 = vmul.f32 %v509_v20, %v420_v51 }
 0x1dc   :  { %v517_v26 = vpack.c.bf16 %v514_v22, %v511_v21  ;;  %v457_v51 = vadd.f32 %v456_v49, %v241_v48  ;;  %v460_v53 = vadd.f32 %v459_v52, %v241_v48  ;;  %v1474_v49 = vld [vmem:[#allocation17 + $0x8] sm:$0xff]  }
 0x1dd   :  { %869 = vadd.xlane.f32.xlu0 %v867_v23  ;;  %v761_v27 = vpack.c.bf16 %v515_v25, %v512_v18  ;;  %v868_v28 = vmul.f32 %v515_v25, %v515_v25  ;;  %1334 = vmatpush3.bf16.msra.mxu1 %v1470_v44 }
 0x1de   :  { %1320 = vmatmul.mubr.bf16.vlgmr.msra.gmra.mrb[4].mxu0 %v517_v26  ;;  %1335 = vmatprep.subr.bf16.mxu1 %v1808_v19  ;;  %v465_v55 = vmul.f32 %v457_v51, %v457_v51  ;;  %v468_v56 = vmul.f32 %v460_v53, %v460_v53 }
 0x1df   :  { %1344 = vmatpush3.bf16.msra.mxu0 %v1450_v24  ;;  %1359 = vmatprep.mubr.msk.bf16.mxu0 %vm1809_vm0, %v1808_v19 }
 0x1e0   :  { %1345 = vmatprep.subr.bf16.mxu0 %v1808_v19  ;;  %v471_v57 = vmul.f32 %v465_v55, %v457_v51  ;;  %v474_v58 = vmul.f32 %v468_v56, %v460_v53  ;;  %v1476_v56 = vld [vmem:[#allocation17 + $0x18] sm:$0xff]  }
 0x1e1   :  { %871 = vadd.xlane.f32.xlu0 %v868_v28  ;;  %1336 = vmatpush3.bf16.msra.mxu1 %v1471_v45  ;;  %v1228_v45 = vld [vmem:[#allocation16] ss:$0 sm:$0xff] }
 0x1e2   :  { %1337 = vmatprep.subr.bf16.mxu1 %v1808_v19  ;;  %v477_v59 = vmul.f32 0.044715, %v471_v57  ;;  %v480_v60 = vmul.f32 0.044715, %v474_v58  ;;  %v1477_v57 = vld [vmem:[#allocation17 + $0x20] sm:$0xff]   ;;  %v1478_v58 = vld [vmem:[#allocation17 + $0x28] sm:$0xff]  }
 0x1e3   :  { %1346 = vmatpush3.bf16.msra.mxu0 %v1452_v29 }
 0x1e4   :  { %1347 = vmatprep.subr.bf16.mxu0 %v1808_v19  ;;  %v483_v61 = vadd.f32 %v477_v59, %v457_v51  ;;  %v486_v62 = vadd.f32 %v480_v60, %v460_v53  ;;  %v1479_v59 = vld [vmem:[#allocation17 + $0x30] sm:$0xff]   ;;  %v1480_v60 = vld [vmem:[#allocation17 + $0x38] sm:$0xff]  }
 0x1e5   :  { %1338 = vmatpush3.bf16.msra.mxu1 %v1472_v46 }
 0x1e6   :  { %1363 = vmatprep.subr.bf16.mxu1 %v1808_v19  ;;  %v489_v36 = vmul.f32 0.7978846, %v483_v61  ;;  %v492_v63 = vmul.f32 0.7978846, %v486_v62  ;;  %v1211_v61 = vld [vmem:[#allocation13] ss:$0 sm:$0xff] }
 0x1e7   :  { %1348 = vmatpush3.bf16.msra.mxu0 %v1454_v30 }
 0x1e8   :  { %1349 = vmatprep.subr.bf16.mxu0 %v1808_v19  ;;  %1490 = vtanh.f32 %v489_v36 }
 0x1e9   :  { %1492 = vtanh.f32 %v492_v63 }
 0x1eb   :  { %1350 = vmatpush3.bf16.msra.mxu0 %v1456_v31 }
 0x1ec   :  { %1351 = vmatprep.subr.bf16.mxu0 %v1808_v19 }
 0x1ef   :  { %1352 = vmatpush3.bf16.msra.mxu0 %v1458_v32 }
 0x1f0   :  { %1353 = vmatprep.subr.bf16.mxu0 %v1808_v19 }
 0x1f2   :  { %v1491_v38 = vpop.eup %1490 }
 0x1f3   :  { %1354 = vmatpush3.bf16.msra.mxu0 %v1460_v33  ;;  %v1493_v0 = vpop.eup %1492  ;;  %v501_v1 = vadd.f32 1.0, %v1491_v38 }
 0x1f4   :  { %1355 = vmatprep.subr.bf16.mxu0 %v1808_v19  ;;  %v504_v2 = vadd.f32 1.0, %v1493_v0 }
 0x1f5   :  { %v507_v3 = vmul.f32 0.5, %v501_v1 }
 0x1f6   :  { %v510_v4 = vmul.f32 0.5, %v504_v2 }
 0x1f7   :  { %1356 = vmatpush3.bf16.msra.mxu0 %v1462_v34  ;;  %v2075_v5 = vmul.f32 %v507_v3, %v457_v51 }
 0x1f8   :  { %1357 = vmatprep.subr.bf16.mxu0 %v1808_v19  ;;  %v2077_v6 = vmul.f32 %v510_v4, %v460_v53  ;;  %v1475_v53 = vld [vmem:[#allocation17 + $0x10] sm:$0xff]  }
 0x1fa   :  { %v926_v7 = vpack.c.bf16 %v2077_v6, %v2075_v5 }
 0x1fb   :  { %1358 = vmatpush3.bf16.msra.mxu0 %v1464_v37 }
 0x1fe   :  { %1360 = vmatmul.mubr.bf16.vlgmr.msra.gmra.mrb[8].mxu0 %v761_v27 }
 0x26a   :  { %v870_v33 = vpop.xlane.xlu0 %869 }
 0x26e   :  { %v872_v50 = vpop.xlane.xlu0 %871 }
 0x2b1   :  { %v623_v9 = vpop.f32.mrb[4].mxu0 }
 0x2b2   :  { %v624_v10 = vadd.f32 %v1202_v8, %v623_v9  ;;  %v1321_v11 = vpop.f32.mrb[5].mxu0 }
 0x2b3   :  { %v626_v12 = vpop.f32.mrb[6].mxu0 }
 0x2b4   :  { %v630_v13 = vmul.f32 %v624_v10, %v624_v10  ;;  %v627_v14 = vadd.f32 %v1202_v8, %v626_v12  ;;  %v1322_v15 = vpop.f32.mrb[7].mxu0 }
 0x2b6   :  { %v632_v16 = vmul.f32 %v630_v13, %v624_v10  ;;  %v631_v18 = vmul.f32 %v627_v14, %v627_v14 }
 0x2b8   :  { %v634_v20 = vmul.f32 0.044715, %v632_v16  ;;  %v633_v21 = vmul.f32 %v631_v18, %v627_v14 }
 0x2ba   :  { %v636_v22 = vadd.f32 %v634_v20, %v624_v10  ;;  %v635_v23 = vmul.f32 0.044715, %v633_v21 }
 0x2bc   :  { %v638_v24 = vmul.f32 0.7978846, %v636_v22  ;;  %v637_v25 = vadd.f32 %v635_v23, %v627_v14 }
 0x2be   :  { %1494 = vtanh.f32 %v638_v24  ;;  %v639_v26 = vmul.f32 0.7978846, %v637_v25 }
 0x2c0   :  { %1496 = vtanh.f32 %v639_v26 }
 0x2c8   :  { %v1495_v27 = vpop.eup %1494 }
 0x2c9   :  { %v642_v28 = vadd.f32 1.0, %v1495_v27 }
 0x2ca   :  { %v1497_v29 = vpop.eup %1496 }
 0x2cb   :  { %v644_v30 = vmul.f32 0.5, %v642_v28  ;;  %v643_v31 = vadd.f32 1.0, %v1497_v29 }
 0x2cd   :  { %v645_v32 = vmul.f32 0.5, %v643_v31  ;;  %v2081_v34 = vmul.f32 %v644_v30, %v624_v10 }
 0x2cf   :  { %v2083_v37 = vmul.f32 %v645_v32, %v627_v14  ;;  %v1039_v55 = vmul.f32 %v2081_v34, %v2081_v34 }
 0x2d1   :  { %v860_v40 = vpop.f32.mrb[8].mxu0  ;;  %v648_v41 = vpack.c.bf16 %v2083_v37, %v2081_v34  ;;  %v1040_v2 = vmul.f32 %v2083_v37, %v2083_v37 }
 0x2d2   :  { %v873_v42 = vmul.f32 2.0, %v860_v40  ;;  %v1361_v43 = vpop.f32.mrb[9].mxu0 }
 0x2d3   :  { %v863_v44 = vpop.f32.mrb[10].mxu0  ;;  %1340 = vmatmul.mubr.bf16.vlgmr.msra.gmra.mrb[4].mxu1 %v648_v41 }
 0x2d4   :  { %v875_v46 = vsub.f32 %v870_v33, %v873_v42  ;;  %v874_v47 = vmul.f32 2.0, %v863_v44  ;;  %v1362_v48 = vpop.f32.mrb[11].mxu0  ;;  %1364 = vmatpush3.bf16.msra.mxu1 %v1473_v39  ;;  %1379 = vmatprep.mubr.msk.bf16.mxu1 %vm1809_vm0, %v1808_v19 }
 0x2d5   :  { %1365 = vmatprep.subr.bf16.mxu1 %v1808_v19 }
 0x2d6   :  { %v876_v51 = vsub.f32 %v872_v50, %v874_v47  ;;  %v2090_v52 = vadd.f32 %v1228_v45, %v875_v46 }
 0x2d8   :  { %1366 = vmatpush3.bf16.msra.mxu1 %v1474_v49  ;;  %886 = vmin.xlane.f32.xlu0 %v2090_v52  ;;  %v2093_v54 = vadd.f32 %v1228_v45, %v876_v51 }
 0x2d9   :  { %1367 = vmatprep.subr.bf16.mxu1 %v1808_v19 }
 0x2dc   :  { %1368 = vmatpush3.bf16.msra.mxu1 %v1475_v53  ;;  %1041 = vadd.xlane.f32.xlu0 %v1039_v55 }
 0x2dd   :  { %1369 = vmatprep.subr.bf16.mxu1 %v1808_v19 }
 0x2e0   :  { %1370 = vmatpush3.bf16.msra.mxu1 %v1476_v56 }
 0x2e1   :  { %1371 = vmatprep.subr.bf16.mxu1 %v1808_v19 }
 0x2e4   :  { %1372 = vmatpush3.bf16.msra.mxu1 %v1477_v57 }
 0x2e5   :  { %1373 = vmatprep.subr.bf16.mxu1 %v1808_v19 }
 0x2e8   :  { %1374 = vmatpush3.bf16.msra.mxu1 %v1478_v58  ;;  %v181_v58 = vunpack.c.l.bf16 %v2019_v17 }
 0x2e9   :  { %1375 = vmatprep.subr.bf16.mxu1 %v1808_v19 }
 0x2ec   :  { %1376 = vmatpush3.bf16.msra.mxu1 %v1479_v59 }
 0x2ed   :  { %1377 = vmatprep.subr.bf16.mxu1 %v1808_v19  ;;  %v1229_v19 = vld [vmem:[#allocation19] ss:$0 sm:$0xff] }
 0x2f0   :  { %1378 = vmatpush3.bf16.msra.mxu1 %v1480_v60 }
 0x2f3   :  { %1380 = vmatmul.mubr.bf16.vlgmr.msra.gmra.mrb[8].mxu1 %v926_v7 }
 0x365   :  { %v887_v14 = vpop.xlane.xlu0 %886 }
 0x366   :  { %v890_v18 = vmax.f32 %v887_v14, 0.0  ;;  %vm912_vm2 = vcmp.eq.f32.partialorder %v2090_v52, %v887_v14 }
 0x368   :  { %v1114_v23 = vsel %vm1077_vm1, %v890_v18, 0.0 }
 0x369   :  { %v1042_v30 = vpop.xlane.xlu0 %1041 }
 0x36a   :  { %v1045_v32 = vadd.f32 1e-12, %v1042_v30 }
 0x3a6   :  { %v754_v62 = vpop.f32.mrb[4].mxu1 }
 0x3a7   :  { %v755_v36 = vadd.f32 %v1211_v61, %v754_v62  ;;  %v1341_v63 = vpop.f32.mrb[5].mxu1 }
 0x3a8   :  { %v757_v38 = vpop.f32.mrb[6].mxu1 }
 0x3a9   :  { %892 = vmax.xlane.f32.xlu1 %v755_v36  ;;  %v1342_v0 = vpop.f32.mrb[7].mxu1  ;;  %v758_v1 = vadd.f32 %v1211_v61, %v757_v38  ;;  %v914_v28 = vsel %vm912_vm2, %v755_v36, -inf }
 0x3ad   :  { %894 = vmax.xlane.f32.xlu1 %v758_v1 }
 0x3b1   :  { %888 = vmin.xlane.f32.xlu1 %v2093_v54 }
 0x3b5   :  { %1043 = vadd.xlane.f32.xlu1 %v1040_v2 }
 0x3c6   :  { %v1032_v3 = vpop.f32.mrb[8].mxu1 }
 0x3c7   :  { %v1033_v4 = vadd.f32 %v1229_v19, %v1032_v3  ;;  %v1381_v5 = vpop.f32.mrb[9].mxu1 }
 0x3c8   :  { %v1035_v6 = vpop.f32.mrb[10].mxu1 }
 0x3c9   :  { %v1036_v7 = vadd.f32 %v1229_v19, %v1035_v6  ;;  %v1051_v8 = vmul.f32 %v1033_v4, %v1033_v4  ;;  %v1382_v9 = vpop.f32.mrb[11].mxu1 }
 0x3cb   :  { %1053 = vadd.xlane.f32.xlu0 %v1051_v8  ;;  %v1052_v10 = vmul.f32 %v1036_v7, %v1036_v7 }
 0x3cd   :  { %1055 = vadd.xlane.f32.xlu1 %v1052_v10 }
 0x436   :  { %v893_v11 = vpop.xlane.xlu1 %892 }
 0x437   :  { %v896_v12 = vsub.f32 %v755_v36, %v893_v11 }
 0x439   :  { %v898_v13 = vmul.f32 1.442695, %v896_v12 }
 0x43a   :  { %v895_v15 = vpop.xlane.xlu1 %894 }
 0x43b   :  { %1498 = vpow2.f32 %v898_v13  ;;  %v897_v16 = vsub.f32 %v758_v1, %v895_v15 }
 0x43d   :  { %v900_v20 = vmul.f32 1.442695, %v897_v16 }
 0x43e   :  { %v889_v21 = vpop.xlane.xlu1 %888 }
 0x43f   :  { %1500 = vpow2.f32 %v900_v20  ;;  %v891_v22 = vmax.f32 %v889_v21, 0.0  ;;  %vm913_vm3 = vcmp.eq.f32.partialorder %v2093_v54, %v889_v21 }
 0x440   :  { %v915_v29 = vsel %vm913_vm3, %v758_v1, -inf  ;;  %1502 = vrsqrt.f32 %v1045_v32 }
 0x441   :  { %v1115_v24 = vsel %vm1077_vm1, %v891_v22, 0.0 }
 0x442   :  { %v2111_v25 = vadd.f32 %v1115_v24, %v1114_v23  ;;  %v1044_v31 = vpop.xlane.xlu1 %1043 }
 0x443   :  { %v1046_v33 = vadd.f32 1e-12, %v1044_v31 }
 0x445   :  { %v1499_v26 = vpop.eup %1498  ;;  %1504 = vrsqrt.f32 %v1046_v33 }
 0x446   :  { %902 = vadd.xlane.f32.xlu0 %v1499_v26 }
 0x449   :  { %v1501_v27 = vpop.eup %1500 }
 0x44a   :  { %916 = vmax.xlane.f32.xlu0 %v914_v28  ;;  %904 = vadd.xlane.f32.xlu1 %v1501_v27  ;;  %v1503_v43 = vpop.eup %1502 }
 0x44b   :  { %v1049_v46 = vmul.f32 %v1503_v43, %v2081_v34 }
 0x44e   :  { %918 = vmax.xlane.f32.xlu1 %v915_v29 }
 0x44f   :  { %v1505_v44 = vpop.eup %1504 }
 0x450   :  { %v1050_v50 = vmul.f32 %v1505_v44, %v2083_v37  ;;  %v182_v37 = vunpack.c.h.bf16 %v2019_v17 }
 0x452   :  { %v1411_v1 = vpack.i.bf16 %v182_v37, %v181_v58 }
 0x458   :  { %v1054_v39 = vpop.xlane.xlu0 %1053 }
 0x459   :  { %v1057_v40 = vadd.f32 1e-12, %v1054_v39 }
 0x45a   :  { %v1056_v41 = vpop.xlane.xlu1 %1055 }
 0x45b   :  { %1506 = vrsqrt.f32 %v1057_v40  ;;  %v1058_v42 = vadd.f32 1e-12, %v1056_v41 }
 0x45d   :  { %1508 = vrsqrt.f32 %v1058_v42 }
 0x465   :  { %v1507_v45 = vpop.eup %1506 }
 0x466   :  { %v1061_v47 = vmul.f32 %v1507_v45, %v1033_v4 }
 0x467   :  { %v1509_v48 = vpop.eup %1508 }
 0x468   :  { %v1063_v49 = vmul.f32 %v1061_v47, %v1049_v46  ;;  %v1062_v51 = vmul.f32 %v1509_v48, %v1036_v7 }
 0x46a   :  { %1065 = vadd.xlane.f32.xlu0 %v1063_v49  ;;  %v1064_v52 = vmul.f32 %v1062_v51, %v1050_v50 }
 0x46c   :  { %1067 = vadd.xlane.f32.xlu1 %v1064_v52 }
 0x4d3   :  { %v903_v53 = vpop.xlane.xlu0 %902 }
 0x4d4   :  { %1510 = vlog2.f32 %v903_v53  ;;  %v1143_v53 = vand.u32 127, %v230_v35 }
 0x4d6   :  { %vm1144_vm4 = vcmp.eq.s32.totalorder %v1143_v53, 0  ;;  %vm1147_vm5 = vcmp.eq.s32.totalorder %v1143_v53, 1  ;;  %vm1150_vm6 = vcmp.eq.s32.totalorder %v1143_v53, 2  ;;  %vm1153_vm7 = vcmp.eq.s32.totalorder %v1143_v53, 3 }
 0x4d7   :  { %v905_v54 = vpop.xlane.xlu1 %904  ;;  %v917_v34 = vpop.xlane.xlu0 %916 }
 0x4d8   :  { %1512 = vlog2.f32 %v905_v54 }
 0x4db   :  { %v919_v63 = vpop.xlane.xlu1 %918 }
 0x4de   :  { %v1511_v55 = vpop.eup %1510 }
 0x4df   :  { %v907_v56 = vmul.f32 0.6931472, %v1511_v55 }
 0x4e1   :  { %v910_v57 = vadd.f32 %v907_v56, %v893_v11 }
 0x4e2   :  { %v1513_v59 = vpop.eup %1512 }
 0x4e3   :  { %v920_v60 = vsub.f32 %v910_v57, %v917_v34  ;;  %v909_v61 = vmul.f32 0.6931472, %v1513_v59 }
 0x4e5   :  { %v922_v62 = vmul.f32 %v920_v60, %v181_v58  ;;  %v911_v36 = vadd.f32 %v909_v61, %v895_v15 }
 0x4e7   :  { %v921_v38 = vsub.f32 %v911_v36, %v919_v63  ;;  %1071 = vrot.lane.b32.xlu0 %v922_v62, %s1810_s10 }
 0x4e9   :  { %v923_v0 = vmul.f32 %v921_v38, %v182_v37 }
 0x4eb   :  { %1073 = vrot.lane.b32.xlu1 %v923_v0, %s1810_s10 }
 0x4ef   :  { %1412 = vrot.lane.b32.xlu1 %v1411_v1, %s1810_s10 }
 0x4f7   :  { %v1066_v2 = vpop.xlane.xlu0 %1065 }
 0x4f8   :  { %v1126_v14 = vsub.f32 1.0, %v1066_v2 }
 0x4f9   :  { %v1068_v19 = vpop.xlane.xlu1 %1067 }
 0x4fa   :  { %v1127_v13 = vsub.f32 1.0, %v1068_v19  ;;  %v1130_v16 = vsel %vm1077_vm1, %v1126_v14, 0.0 }
 0x4fc   :  { %v1131_v15 = vsel %vm1077_vm1, %v1127_v13, 0.0 }
 0x4fd   :  { %v1132_v18 = vadd.f32 %v1131_v15, %v1130_v16 }
 0x559   :  { %v1072_v3 = vpop.permute.xlu0 %1071 }
 0x55a   :  { %v1078_v5 = vsel %vm1077_vm1, %v1072_v3, 0.0 }
 0x55d   :  { %v1074_v4 = vpop.permute.xlu1 %1073 }
 0x55e   :  { %v1079_v6 = vsel %vm1077_vm1, %v1074_v4, 0.0 }
 0x55f   :  { %v1080_v7 = vadd.f32 %v1079_v6, %v1078_v5 }
 0x561   :  { %v1413_v8 = vpop.permute.xlu1 %1412  ;;  %1081 = vadd.xlane.f32.xlu1 %v1080_v7 }
 0x562   :  { %v1415_v17 = vunpack.i.h.bf16 %v1413_v8  ;;  %v1414_v9 = vunpack.i.l.bf16 %v1413_v8 }
 0x564   :  { %v1100_v10 = vsel %vm1077_vm1, %v1414_v9, 0.0  ;;  %v1101_v11 = vsel %vm1077_vm1, %v1415_v17, 0.0 }
 0x565   :  { %v1102_v12 = vadd.f32 %v1101_v11, %v1100_v10 }
 0x567   :  { %1103 = vadd.xlane.f32.xlu0 %v1102_v12 }
 0x56b   :  { %1117 = vadd.xlane.f32.xlu0 %v2111_v25 }
 0x56f   :  { %1133 = vadd.xlane.f32.xlu0 %v1132_v18 }
 0x5ee   :  { %v1082_v20 = vpop.xlane.xlu1 %1081 }
 0x5ef   :  { %v1083_v21 = vrot.slane %v1082_v20, 4 }
 0x5f1   :  { %v1084_v22 = vadd.f32 %v1083_v21, %v1082_v20 }
 0x5f3   :  { %v1085_v23 = vrot.slane %v1084_v22, 2 }
 0x5f4   :  { %v1104_v24 = vpop.xlane.xlu0 %1103 }
 0x5f5   :  { %v1105_v26 = vrot.slane %v1104_v24, 4  ;;  %v1086_v27 = vadd.f32 %v1085_v23, %v1084_v22 }
 0x5f7   :  { %v1106_v28 = vadd.f32 %v1105_v26, %v1104_v24  ;;  %v1087_v29 = vrot.slane %v1086_v27, 1 }
 0x5f8   :  { %v1118_v30 = vpop.xlane.xlu0 %1117 }
 0x5f9   :  { %v1107_v31 = vrot.slane %v1106_v28, 2  ;;  %v1119_v32 = vrot.slane %v1118_v30, 4  ;;  %v1088_v33 = vadd.f32 %v1087_v29, %v1086_v27 }
 0x5fb   :  { %v1120_v39 = vadd.f32 %v1119_v32, %v1118_v30  ;;  %1383 = vpush %v1088_v33  ;;  %v1108_v25 = vadd.f32 %v1107_v31, %v1106_v28 }
 0x5fc   :  { %v1134_v40 = vpop.xlane.xlu0 %1133 }
 0x5fd   :  { %v1121_v41 = vrot.slane %v1120_v39, 2  ;;  %v1135_v42 = vrot.slane %v1134_v40, 4  ;;  %v1109_v43 = vrot.slane %v1108_v25, 1 }
 0x5ff   :  { %v1136_v44 = vadd.f32 %v1135_v42, %v1134_v40  ;;  %v1110_v45 = vadd.f32 %v1109_v43, %v1108_v25  ;;  %v1122_v46 = vadd.f32 %v1121_v41, %v1120_v39 }
 0x601   :  { %v1137_v47 = vrot.slane %v1136_v44, 2  ;;  %1385 = vpush %v1110_v45  ;;  %v1123_v48 = vrot.slane %v1122_v46, 1 }
 0x603   :  { %v1138_v49 = vadd.f32 %v1137_v47, %v1136_v44  ;;  %v1124_v50 = vadd.f32 %v1123_v48, %v1122_v46 }
 0x605   :  { %1387 = vpush %v1124_v50  ;;  %v1139_v51 = vrot.slane %v1138_v49, 1 }
 0x607   :  { %v1140_v52 = vadd.f32 %v1139_v51, %v1138_v49 }
 0x609   :  { %1389 = vpush %v1140_v52 }
 0x62c   :  { %s1384_s23 = spop %1383 }
 0x62d   :  { %v1145_v54 = vstv %s1384_s23 }
 0x62e   :  { %v1146_v57 = vsel %vm1144_vm4, %v1145_v54, 0.0 }
 0x632   :  { %s1386_s4 = spop %1385 }
 0x633   :  { %v1148_v55 = vstv %s1386_s4 }
 0x634   :  { %v1149_v58 = vsel %vm1147_vm5, %v1148_v55, %v1146_v57 }
 0x636   :  { %s1388_s0 = spop %1387 }
 0x637   :  { %v1151_v56 = vstv %s1388_s0 }
 0x638   :  { %v1152_v59 = vsel %vm1150_vm6, %v1151_v56, %v1149_v58 }
 0x63a   :  { %s1390_s1 = spop %1389 }
 0x63b   :  { %v1154_v34 = vstv %s1390_s1 }
 0x63c   :  { %v1155_v60 = vsel %vm1153_vm7, %v1154_v34, %v1152_v59 }
 0x63d   :  { %1156 = vst [vmem:[#allocation20] sm:$0xff] %v1155_v60 }
 0x63e   :  { %1767 = shalt.err (!%p1764_p8)
}
 0x63f   :  { %s1768_s5 = scalar_lea.hbm %s2150_s11, 128 }
 0x640   :  { %p1769_p9 = scmp.ne.s32.totalorder %s2150_s11, %s1768_s5  ;;  %p1772_p10 = scmp.lt.u32.totalorder %s1768_s5, %s2150_s11 }
 0x642   :  { %p1774_p11 = pnand %p1772_p10, %p1769_p9 }
 0x644   :  { %1777 = shalt.err (!%p1774_p11)
}
 0x645   :  { %1166 = dma.vmem_to_hbm [thread:$0]  %s1164_s24, 128, %s2150_s11, [#allocation4]  }
 0x646   :  { %1790 = dma.done.wait [#allocation4], 128  }
 0x647   :  { %1791 = vsyncadd [#allocation4], 4294967168 }
 0x648   :  { %1170 = vsyncpa [#allocation3], 1 }
 0x649   :  { %1171 = vsyncpa [#allocation6], 1 }
 0x64a   :  { %1172 = vsyncpa [#allocation9], 1 }
 0x64b   :  { %1173 = vsyncpa [#allocation12], 1 }
 0x64c   :  { %1174 = vsyncpa [#allocation15], 1 }
 0x64d   :  { %1175 = vsyncpa [#allocation18], 1 }
 0x64e   :  { %1176 = vsyncpa [#allocation4], 1 }

</bundles_post_ra>
